<compile_context>
chip_gen: v6e
topology: v6e:2x2x1
jax: 0.10.0
libtpu: 0.0.40
codegen_flags: <defaults>
</compile_context>

<pallas_src>
import functools
import math

import jax
import jax.numpy as jnp
from jax import lax
from jax.experimental import pallas as pl
from jax.experimental.pallas import tpu as pltpu


def _layer_norm(h, g, b, eps=1e-5):
    mu = jnp.mean(h, axis=-1, keepdims=True)
    var = jnp.mean((h - mu) ** 2, axis=-1, keepdims=True)
    return (h - mu) * jax.lax.rsqrt(var + eps) * g + b


def _softmax_lastdim(s):
    m = jnp.max(s, axis=-1, keepdims=True)
    e = jnp.exp(s - m)
    denom = jnp.sum(e, axis=-1, keepdims=True)
    return e * pl.reciprocal(denom, approx=True)


def _pick_bt(B):
    for bt in (32, 16, 8):
        if B % bt == 0:
            return bt
    return B


# ---------------------------------------------------------------------------
# Fused kernel: grid = (batch_tiles, depth).  One OurBlk layer per grid step;
# the token residual stream lives in the VMEM scratch across the depth axis.
# ---------------------------------------------------------------------------
def _fused_kernel(x_ref, w_emb_ref, b_emb_ref, g_emb_ref, beta_emb_ref, cls_ref,
                  g1_ref, be1_ref, wqkv_ref, wo_ref, g2_ref, be2_ref,
                  w1_ref, b1_ref, w2_ref, b2_ref, w_head_ref, b_head_ref,
                  out_ref, tok_ref, *,
                  depth, n_tasks, S, T, Tp, Bt, D):
    d = pl.program_id(1)
    G = Bt * S                     # independent token streams in this tile
    N = T - 1                      # variates per stream (cls token excluded)
    scale = 1.0 / math.sqrt(D)

    # ---- inverted value-embedding + LN + cls concat (once per batch tile) ---
    @pl.when(d == 0)
    def _build_tokens():
        xb = x_ref[...]                                         # (Bt, N, L) f32
        L = xb.shape[-1]
        x2 = xb.reshape(Bt * N, L).astype(jnp.bfloat16)
        emb = jnp.dot(x2, w_emb_ref[...],
                      preferred_element_type=jnp.float32)        # (Bt*N, D)
        emb = emb + b_emb_ref[...]
        emb = _layer_norm(emb, g_emb_ref[...], beta_emb_ref[...])
        emb3 = emb.reshape(Bt, N, D)
        cls = cls_ref[...]                                       # (S, D) f32
        pad = Tp - 1 - N
        pieces = []
        for s in range(S):                                       # S is small/static
            cls_b = jnp.broadcast_to(cls[s:s + 1, :][:, None, :], (Bt, 1, D))
            parts = [cls_b, emb3]
            if pad > 0:
                parts.append(jnp.zeros((Bt, pad, D), jnp.float32))
            pieces.append(jnp.concatenate(parts, axis=1))        # (Bt, Tp, D)
        tok0 = jnp.concatenate(pieces, axis=0)                   # (G, Tp, D), g = s*Bt + bt
        tok_ref[...] = tok0.reshape(G * Tp, D)

    tok = tok_ref[...]                                           # (G*Tp, D) f32

    # ---- one OurBlk layer (weights for layer `d` selected by BlockSpec) -----
    h = _layer_norm(tok, g1_ref[0], be1_ref[0]).astype(jnp.bfloat16)
    qkv = jnp.dot(h, wqkv_ref[0], preferred_element_type=jnp.float32)   # (G*Tp, 3D)
    q = qkv[:, :D].reshape(G, Tp, D).astype(jnp.bfloat16)
    k = qkv[:, D:2 * D].reshape(G, Tp, D).astype(jnp.bfloat16)
    v = qkv[:, 2 * D:].reshape(G, Tp, D).astype(jnp.bfloat16)

    # per-stream attention (no (M, M) block-diagonal mask)
    scores = jnp.einsum('gtd,gsd->gts', q, k,
                        preferred_element_type=jnp.float32) * scale      # (G, Tp, Tp) f32
    if Tp > T:  # mask padded key tokens; keep mask/scores in f32 (never bf16)
        col = lax.broadcasted_iota(jnp.int32, (1, 1, Tp), 2)
        scores = scores + jnp.where(col < T, 0.0, -1e30).astype(jnp.float32)
    p = _softmax_lastdim(scores)
    attn = jnp.einsum('gts,gsd->gtd', p.astype(jnp.bfloat16), v,
                      preferred_element_type=jnp.float32)                 # (G, Tp, D)
    attn2 = attn.reshape(G * Tp, D).astype(jnp.bfloat16)
    tok = tok + jnp.dot(attn2, wo_ref[0], preferred_element_type=jnp.float32)

    h2 = _layer_norm(tok, g2_ref[0], be2_ref[0]).astype(jnp.bfloat16)
    ff = jnp.dot(h2, w1_ref[0], preferred_element_type=jnp.float32) + b1_ref[0]
    # TODO(synk): PyTorch nn.GELU default is exact erf; tanh approx used here.
    ff = jax.nn.gelu(ff, approximate=True).astype(jnp.bfloat16)
    tok = tok + jnp.dot(ff, w2_ref[0], preferred_element_type=jnp.float32) + b2_ref[0]
    tok_ref[...] = tok

    # ---- fused task heads on the cls rows (lane-dense padded output slab) ---
    @pl.when(d == depth - 1)
    def _heads():
        tok3 = tok.reshape(G, Tp, D)
        cls_all = tok3[:, 0, :]                                  # (G, D): cls of each stream
        cls_cat = jnp.concatenate(
            [cls_all[i * Bt:(i + 1) * Bt, :] for i in range(n_tasks)],
            axis=-1)                                             # (Bt, n_tasks*D)
        logits = jnp.dot(cls_cat.astype(jnp.bfloat16), w_head_ref[...],
                         preferred_element_type=jnp.float32) + b_head_ref[...]
        out_ref[...] = logits.astype(out_ref.dtype)              # (Bt, P) lane-dense


# ---------------------------------------------------------------------------
# Model wrapper: parameter setup + single fused pallas_call.
# ---------------------------------------------------------------------------
class OurModelPallas:
    def __init__(self, *, seq_len, n_vars, d_model, tasks, depth, key):
        self.tasks = tuple(int(t) for t in tasks)
        self.n_tasks = len(self.tasks)
        self.dim = d_model
        self.hidden = 4 * d_model
        self.depth = depth
        self.n_vars = n_vars
        self.seq_len = seq_len
        D, H = d_model, 4 * d_model
        S = self.n_tasks + 1

        keys = iter(jax.random.split(key, 8 + self.n_tasks))

        def w(shape, scale=0.02):
            return (scale * jax.random.normal(next(keys), shape)).astype(jnp.float32)

        # iTransformer inverted value-embedding + LayerNorm (encoder.encode)
        self.w_emb = w((seq_len, D)).astype(jnp.bfloat16)
        self.b_emb = jnp.zeros((1, D), jnp.float32)
        self.g_emb = jnp.ones((1, D), jnp.float32)
        self.beta_emb = jnp.zeros((1, D), jnp.float32)

        # nn.Parameter(torch.zeros(1, 1, dim)) per stream, stacked as (S, D)
        self.cls_tokens = jnp.zeros((S, D), jnp.float32)

        # Per-layer OurBlk weights stacked along a leading depth axis; only the
        # active layer's slice is resident in VMEM (depth is a grid axis).
        self.g1 = jnp.ones((depth, 1, D), jnp.float32)
        self.be1 = jnp.zeros((depth, 1, D), jnp.float32)
        self.wqkv = w((depth, D, 3 * D)).astype(jnp.bfloat16)   # fused Q/K/V
        self.wo = w((depth, D, D)).astype(jnp.bfloat16)
        self.g2 = jnp.ones((depth, 1, D), jnp.float32)
        self.be2 = jnp.zeros((depth, 1, D), jnp.float32)
        self.w1 = w((depth, D, H)).astype(jnp.bfloat16)
        self.b1 = jnp.zeros((depth, 1, H), jnp.float32)
        self.w2 = w((depth, H, D)).astype(jnp.bfloat16)
        self.b2 = jnp.zeros((depth, 1, D), jnp.float32)

        # Fused block-diagonal task head: rows [i*D:(i+1)*D] x cols
        # [off_i:off_i+tasks[i]] hold head i's weight; padded to 128 lanes.
        total = sum(self.tasks)
        self.P = max(128, ((total + 127) // 128) * 128)
        wh = jnp.zeros((self.n_tasks * D, self.P), jnp.float32)
        off = 0
        for i, ti in enumerate(self.tasks):
            wh = wh.at[i * D:(i + 1) * D, off:off + ti].set(w((D, ti)))
            off += ti
        self.w_head = wh.astype(jnp.bfloat16)
        self.b_head = jnp.zeros((1, self.P), jnp.float32)

    def forward_features(self, x, softmax=True):
        B, L, N = x.shape
        assert N == self.n_vars and L == self.seq_len
        D, H = self.dim, self.hidden
        S = self.n_tasks + 1
        T = N + 1
        Tp = ((T + 7) // 8) * 8          # pad tokens/stream to sublane multiple
        Bt = _pick_bt(B)
        assert B % Bt == 0
        depth = self.depth
        G = Bt * S
        P = self.P

        # lane-dense input for the embedding matmul (L on the lane axis)
        x_t = jnp.transpose(x, (0, 2, 1)).astype(jnp.float32)    # (B, N, L)

        kernel = functools.partial(
            _fused_kernel, depth=depth, n_tasks=self.n_tasks,
            S=S, T=T, Tp=Tp, Bt=Bt, D=D)

        in_specs = [
            pl.BlockSpec((Bt, N, L), lambda b, d: (b, 0, 0)),            # x tile
            pl.BlockSpec((L, D), lambda b, d: (0, 0)),                   # w_emb
            pl.BlockSpec((1, D), lambda b, d: (0, 0)),                   # b_emb
            pl.BlockSpec((1, D), lambda b, d: (0, 0)),                   # g_emb
            pl.BlockSpec((1, D), lambda b, d: (0, 0)),                   # beta_emb
            pl.BlockSpec((S, D), lambda b, d: (0, 0)),                   # cls tokens
            pl.BlockSpec((1, 1, D), lambda b, d: (d, 0, 0)),             # g1
            pl.BlockSpec((1, 1, D), lambda b, d: (d, 0, 0)),             # be1
            pl.BlockSpec((1, D, 3 * D), lambda b, d: (d, 0, 0)),         # wqkv
            pl.BlockSpec((1, D, D), lambda b, d: (d, 0, 0)),             # wo
            pl.BlockSpec((1, 1, D), lambda b, d: (d, 0, 0)),             # g2
            pl.BlockSpec((1, 1, D), lambda b, d: (d, 0, 0)),             # be2
            pl.BlockSpec((1, D, H), lambda b, d: (d, 0, 0)),             # w1
            pl.BlockSpec((1, 1, H), lambda b, d: (d, 0, 0)),             # b1
            pl.BlockSpec((1, H, D), lambda b, d: (d, 0, 0)),             # w2
            pl.BlockSpec((1, 1, D), lambda b, d: (d, 0, 0)),             # b2
            pl.BlockSpec((self.n_tasks * D, P), lambda b, d: (0, 0)),    # w_head
            pl.BlockSpec((1, P), lambda b, d: (0, 0)),                   # b_head
        ]

        out_padded = pl.pallas_call(
            kernel,
            out_shape=jax.ShapeDtypeStruct((B, P), jnp.float32),
            grid=(B // Bt, depth),                  # depth is innermost (carry axis)
            in_specs=in_specs,
            out_specs=pl.BlockSpec((Bt, P), lambda b, d: (b, 0)),
            scratch_shapes=[pltpu.VMEM((G * Tp, D), jnp.float32)],   # token stream
            compiler_params=pltpu.CompilerParams(
                dimension_semantics=("parallel", "arbitrary"),
                vmem_limit_bytes=48 * 1024 * 1024),
        )(x_t, self.w_emb, self.b_emb, self.g_emb, self.beta_emb, self.cls_tokens,
          self.g1, self.be1, self.wqkv, self.wo, self.g2, self.be2,
          self.w1, self.b1, self.w2, self.b2, self.w_head, self.b_head)

        # Per-task slicing + exact softmax (matches torch: softmax unless task==1).
        preds = {}
        off = 0
        for i, ti in enumerate(self.tasks):
            logit = out_padded[:, off:off + ti]
            off += ti
            if softmax and ti != 1:
                logit = jax.nn.softmax(logit, axis=-1)
            preds[i] = logit
        return preds


if __name__ == "__main__":
    key = jax.random.PRNGKey(0)
    B, L, N, D = 2, 16, 4, 32          # batch, seq_len, n_variates, d_model
    tasks = (3, 1)                     # task 0: 3-way classification (softmax);
                                       # task 1: scalar regression (no softmax)
    depth = 2

    model = OurModelPallas(seq_len=L, n_vars=N, d_model=D, tasks=tasks,
                           depth=depth, key=jax.random.fold_in(key, 1))
    x = jax.random.normal(jax.random.fold_in(key, 2), (B, L, N), jnp.float32)

    preds = model.forward_features(x, softmax=True)
    for v in preds.values():
        jax.block_until_ready(v)

    assert preds[0].shape == (B, 3) and preds[1].shape == (B, 1)
    assert bool(jnp.all(jnp.isfinite(preds[0]))) and bool(jnp.all(jnp.isfinite(preds[1])))
    # classification probabilities sum to 1 (exact softmax in the wrapper)
    assert bool(jnp.allclose(jnp.sum(preds[0], axis=-1), 1.0, atol=1e-3))
    print("KERNEL_OK")
</pallas_src>

<mosaic_0001>
module attributes {stable_mosaic.version = 11 : i64} {
  func.func @_fused_kernel(%arg0: i32, %arg1: i32, %arg2: memref<2x4x16xf32, #tpu.memory_space<vmem>>, %arg3: memref<16x32xbf16, #tpu.memory_space<vmem>>, %arg4: memref<1x32xf32, #tpu.memory_space<vmem>>, %arg5: memref<1x32xf32, #tpu.memory_space<vmem>>, %arg6: memref<1x32xf32, #tpu.memory_space<vmem>>, %arg7: memref<3x32xf32, #tpu.memory_space<vmem>>, %arg8: memref<1x1x32xf32, #tpu.memory_space<vmem>>, %arg9: memref<1x1x32xf32, #tpu.memory_space<vmem>>, %arg10: memref<1x32x96xbf16, #tpu.memory_space<vmem>>, %arg11: memref<1x32x32xbf16, #tpu.memory_space<vmem>>, %arg12: memref<1x1x32xf32, #tpu.memory_space<vmem>>, %arg13: memref<1x1x32xf32, #tpu.memory_space<vmem>>, %arg14: memref<1x32x128xbf16, #tpu.memory_space<vmem>>, %arg15: memref<1x1x128xf32, #tpu.memory_space<vmem>>, %arg16: memref<1x128x32xbf16, #tpu.memory_space<vmem>>, %arg17: memref<1x1x32xf32, #tpu.memory_space<vmem>>, %arg18: memref<64x128xbf16, #tpu.memory_space<vmem>>, %arg19: memref<1x128xf32, #tpu.memory_space<vmem>>, %arg20: memref<2x128xf32, #tpu.memory_space<vmem>>, %arg21: memref<48x32xf32, #tpu.memory_space<vmem>>) attributes {dimension_semantics = [#tpu.dimension_semantics<parallel>, #tpu.dimension_semantics<arbitrary>], iteration_bounds = array<i64: 1, 2>, scalar_prefetch = 0 : i64, scratch_operands = 1 : i64, tpu.core_type = #tpu.core_type<tc>, window_params = [{transform_indices = @transform_0, window_bounds = array<i64: 2, 4, 16>}, {pipeline_mode = #tpu.pipeline_mode<synchronous>, transform_indices = @transform_1, window_bounds = array<i64: 16, 32>}, {pipeline_mode = #tpu.pipeline_mode<synchronous>, transform_indices = @transform_2, window_bounds = array<i64: 1, 32>}, {pipeline_mode = #tpu.pipeline_mode<synchronous>, transform_indices = @transform_3, window_bounds = array<i64: 1, 32>}, {pipeline_mode = #tpu.pipeline_mode<synchronous>, transform_indices = @transform_4, window_bounds = array<i64: 1, 32>}, {pipeline_mode = #tpu.pipeline_mode<synchronous>, transform_indices = @transform_5, window_bounds = array<i64: 3, 32>}, {transform_indices = @transform_6, window_bounds = array<i64: 1, 1, 32>}, {transform_indices = @transform_7, window_bounds = array<i64: 1, 1, 32>}, {transform_indices = @transform_8, window_bounds = array<i64: 1, 32, 96>}, {transform_indices = @transform_9, window_bounds = array<i64: 1, 32, 32>}, {transform_indices = @transform_10, window_bounds = array<i64: 1, 1, 32>}, {transform_indices = @transform_11, window_bounds = array<i64: 1, 1, 32>}, {transform_indices = @transform_12, window_bounds = array<i64: 1, 32, 128>}, {transform_indices = @transform_13, window_bounds = array<i64: 1, 1, 128>}, {transform_indices = @transform_14, window_bounds = array<i64: 1, 128, 32>}, {transform_indices = @transform_15, window_bounds = array<i64: 1, 1, 32>}, {pipeline_mode = #tpu.pipeline_mode<synchronous>, transform_indices = @transform_16, window_bounds = array<i64: 64, 128>}, {pipeline_mode = #tpu.pipeline_mode<synchronous>, transform_indices = @transform_17, window_bounds = array<i64: 1, 128>}, {transform_indices = @transform_18, window_bounds = array<i64: 2, 128>}]} {
    %c0_i32 = arith.constant 0 : i32
    %0 = arith.cmpi eq, %arg1, %c0_i32 : i32
    %1 = arith.extui %0 : i1 to i32
    %c0_i32_0 = arith.constant 0 : i32
    %2 = arith.cmpi ne, %1, %c0_i32_0 : i32
    scf.if %2 {
      %c0_59 = arith.constant 0 : index
      %c0_60 = arith.constant 0 : index
      %c0_61 = arith.constant 0 : index
      %132 = vector.load %arg2[%c0_59, %c0_60, %c0_61] : memref<2x4x16xf32, #tpu.memory_space<vmem>>, vector<2x4x16xf32>
      %133 = vector.shape_cast %132 : vector<2x4x16xf32> to vector<8x16xf32>
      %134 = arith.truncf %133 : vector<8x16xf32> to vector<8x16xbf16>
      %c0_62 = arith.constant 0 : index
      %c0_63 = arith.constant 0 : index
      %135 = vector.load %arg3[%c0_62, %c0_63] : memref<16x32xbf16, #tpu.memory_space<vmem>>, vector<16x32xbf16>
      %cst_64 = arith.constant dense<0.000000e+00> : vector<8x32xf32>
      %136 = tpu.matmul %134, %135, %cst_64 {dimension_numbers = #tpu.dot_dimension_numbers<[1], [0], [0], [1], [0, 0, 1, 1], [], []>} : vector<8x16xbf16>, vector<16x32xbf16>, vector<8x32xf32> -> vector<8x32xf32>
      %c0_65 = arith.constant 0 : index
      %c0_66 = arith.constant 0 : index
      %137 = vector.load %arg4[%c0_65, %c0_66] : memref<1x32xf32, #tpu.memory_space<vmem>>, vector<1x32xf32>
      %138 = vector.broadcast %137 : vector<1x32xf32> to vector<8x32xf32>
      %139 = arith.addf %136, %138 : vector<8x32xf32>
      %c0_67 = arith.constant 0 : index
      %c0_68 = arith.constant 0 : index
      %140 = vector.load %arg5[%c0_67, %c0_68] : memref<1x32xf32, #tpu.memory_space<vmem>>, vector<1x32xf32>
      %c0_69 = arith.constant 0 : index
      %c0_70 = arith.constant 0 : index
      %141 = vector.load %arg6[%c0_69, %c0_70] : memref<1x32xf32, #tpu.memory_space<vmem>>, vector<1x32xf32>
      %cst_71 = arith.constant dense<0.000000e+00> : vector<8xf32>
      %142 = vector.multi_reduction <add>, %139, %cst_71 [1] : vector<8x32xf32> to vector<8xf32>
      %143 = vector.shape_cast %142 : vector<8xf32> to vector<8x1xf32>
      %cst_72 = arith.constant 3.200000e+01 : f32
      %144 = vector.broadcast %cst_72 : f32 to vector<8x1xf32>
      %145 = arith.divf %143, %144 : vector<8x1xf32>
      %146 = vector.broadcast %145 : vector<8x1xf32> to vector<8x32xf32>
      %147 = arith.subf %139, %146 : vector<8x32xf32>
      %148 = arith.mulf %147, %147 : vector<8x32xf32>
      %cst_73 = arith.constant dense<0.000000e+00> : vector<8xf32>
      %149 = vector.multi_reduction <add>, %148, %cst_73 [1] : vector<8x32xf32> to vector<8xf32>
      %150 = vector.shape_cast %149 : vector<8xf32> to vector<8x1xf32>
      %cst_74 = arith.constant 3.200000e+01 : f32
      %151 = vector.broadcast %cst_74 : f32 to vector<8x1xf32>
      %152 = arith.divf %150, %151 : vector<8x1xf32>
      %153 = vector.broadcast %145 : vector<8x1xf32> to vector<8x32xf32>
      %154 = arith.subf %139, %153 : vector<8x32xf32>
      %cst_75 = arith.constant 9.99999974E-6 : f32
      %155 = vector.broadcast %cst_75 : f32 to vector<8x1xf32>
      %156 = arith.addf %152, %155 : vector<8x1xf32>
      %157 = math.rsqrt %156 : vector<8x1xf32>
      %158 = vector.broadcast %157 : vector<8x1xf32> to vector<8x32xf32>
      %159 = arith.mulf %154, %158 : vector<8x32xf32>
      %160 = vector.broadcast %140 : vector<1x32xf32> to vector<8x32xf32>
      %161 = arith.mulf %159, %160 : vector<8x32xf32>
      %162 = vector.broadcast %141 : vector<1x32xf32> to vector<8x32xf32>
      %163 = arith.addf %161, %162 : vector<8x32xf32>
      %164 = vector.shape_cast %163 : vector<8x32xf32> to vector<2x4x32xf32>
      %c0_76 = arith.constant 0 : index
      %c0_77 = arith.constant 0 : index
      %165 = vector.load %arg7[%c0_76, %c0_77] : memref<3x32xf32, #tpu.memory_space<vmem>>, vector<3x32xf32>
      %166 = vector.extract_strided_slice %165 {offsets = [0, 0], sizes = [1, 32], strides = [1, 1]} : vector<3x32xf32> to vector<1x32xf32>
      %167 = vector.shape_cast %166 : vector<1x32xf32> to vector<1x1x32xf32>
      %168 = vector.shape_cast %167 : vector<1x1x32xf32> to vector<1x1x32xf32>
      %169 = vector.broadcast %168 : vector<1x1x32xf32> to vector<2x1x32xf32>
      %cst_78 = arith.constant 0.000000e+00 : f32
      %170 = vector.broadcast %cst_78 : f32 to vector<2x3x32xf32>
      %171 = tpu.concatenate %169, %164, %170 in 1 : vector<2x1x32xf32>, vector<2x4x32xf32>, vector<2x3x32xf32> -> vector<2x8x32xf32>
      %172 = vector.extract_strided_slice %165 {offsets = [1, 0], sizes = [1, 32], strides = [1, 1]} : vector<3x32xf32> to vector<1x32xf32>
      %173 = vector.shape_cast %172 : vector<1x32xf32> to vector<1x1x32xf32>
      %174 = vector.shape_cast %173 : vector<1x1x32xf32> to vector<1x1x32xf32>
      %175 = vector.broadcast %174 : vector<1x1x32xf32> to vector<2x1x32xf32>
      %cst_79 = arith.constant 0.000000e+00 : f32
      %176 = vector.broadcast %cst_79 : f32 to vector<2x3x32xf32>
      %177 = tpu.concatenate %175, %164, %176 in 1 : vector<2x1x32xf32>, vector<2x4x32xf32>, vector<2x3x32xf32> -> vector<2x8x32xf32>
      %178 = vector.extract_strided_slice %165 {offsets = [2, 0], sizes = [1, 32], strides = [1, 1]} : vector<3x32xf32> to vector<1x32xf32>
      %179 = vector.shape_cast %178 : vector<1x32xf32> to vector<1x1x32xf32>
      %180 = vector.shape_cast %179 : vector<1x1x32xf32> to vector<1x1x32xf32>
      %181 = vector.broadcast %180 : vector<1x1x32xf32> to vector<2x1x32xf32>
      %cst_80 = arith.constant 0.000000e+00 : f32
      %182 = vector.broadcast %cst_80 : f32 to vector<2x3x32xf32>
      %183 = tpu.concatenate %181, %164, %182 in 1 : vector<2x1x32xf32>, vector<2x4x32xf32>, vector<2x3x32xf32> -> vector<2x8x32xf32>
      %184 = tpu.concatenate %171, %177, %183 in 0 : vector<2x8x32xf32>, vector<2x8x32xf32>, vector<2x8x32xf32> -> vector<6x8x32xf32>
      %185 = vector.shape_cast %184 : vector<6x8x32xf32> to vector<48x32xf32>
      %c0_81 = arith.constant 0 : index
      %c0_82 = arith.constant 0 : index
      %186 = vector.load %arg21[%c0_81, %c0_82] : memref<48x32xf32, #tpu.memory_space<vmem>>, vector<48x32xf32>
      tpu.vector_store %arg21[%c0_81, %c0_82], %185 {strides = array<i32>} : memref<48x32xf32, #tpu.memory_space<vmem>>, vector<48x32xf32>,
    } else {
    }
    %c0 = arith.constant 0 : index
    %c0_1 = arith.constant 0 : index
    %3 = vector.load %arg21[%c0, %c0_1] : memref<48x32xf32, #tpu.memory_space<vmem>>, vector<48x32xf32>
    %c0_2 = arith.constant 0 : index
    %c0_3 = arith.constant 0 : index
    %c0_4 = arith.constant 0 : index
    %4 = vector.load %arg8[%c0_2, %c0_3, %c0_4] : memref<1x1x32xf32, #tpu.memory_space<vmem>>, vector<1x1x32xf32>
    %5 = vector.shape_cast %4 : vector<1x1x32xf32> to vector<1x32xf32>
    %c0_5 = arith.constant 0 : index
    %c0_6 = arith.constant 0 : index
    %c0_7 = arith.constant 0 : index
    %6 = vector.load %arg9[%c0_5, %c0_6, %c0_7] : memref<1x1x32xf32, #tpu.memory_space<vmem>>, vector<1x1x32xf32>
    %7 = vector.shape_cast %6 : vector<1x1x32xf32> to vector<1x32xf32>
    %cst = arith.constant dense<0.000000e+00> : vector<48xf32>
    %8 = vector.multi_reduction <add>, %3, %cst [1] : vector<48x32xf32> to vector<48xf32>
    %9 = vector.shape_cast %8 : vector<48xf32> to vector<48x1xf32>
    %cst_8 = arith.constant 3.200000e+01 : f32
    %10 = vector.broadcast %cst_8 : f32 to vector<48x1xf32>
    %11 = arith.divf %9, %10 : vector<48x1xf32>
    %12 = vector.broadcast %11 : vector<48x1xf32> to vector<48x32xf32>
    %13 = arith.subf %3, %12 : vector<48x32xf32>
    %14 = arith.mulf %13, %13 : vector<48x32xf32>
    %cst_9 = arith.constant dense<0.000000e+00> : vector<48xf32>
    %15 = vector.multi_reduction <add>, %14, %cst_9 [1] : vector<48x32xf32> to vector<48xf32>
    %16 = vector.shape_cast %15 : vector<48xf32> to vector<48x1xf32>
    %cst_10 = arith.constant 3.200000e+01 : f32
    %17 = vector.broadcast %cst_10 : f32 to vector<48x1xf32>
    %18 = arith.divf %16, %17 : vector<48x1xf32>
    %19 = vector.broadcast %11 : vector<48x1xf32> to vector<48x32xf32>
    %20 = arith.subf %3, %19 : vector<48x32xf32>
    %cst_11 = arith.constant 9.99999974E-6 : f32
    %21 = vector.broadcast %cst_11 : f32 to vector<48x1xf32>
    %22 = arith.addf %18, %21 : vector<48x1xf32>
    %23 = math.rsqrt %22 : vector<48x1xf32>
    %24 = vector.broadcast %23 : vector<48x1xf32> to vector<48x32xf32>
    %25 = arith.mulf %20, %24 : vector<48x32xf32>
    %26 = vector.broadcast %5 : vector<1x32xf32> to vector<48x32xf32>
    %27 = arith.mulf %25, %26 : vector<48x32xf32>
    %28 = vector.broadcast %7 : vector<1x32xf32> to vector<48x32xf32>
    %29 = arith.addf %27, %28 : vector<48x32xf32>
    %30 = arith.truncf %29 : vector<48x32xf32> to vector<48x32xbf16>
    %c0_12 = arith.constant 0 : index
    %c0_13 = arith.constant 0 : index
    %c0_14 = arith.constant 0 : index
    %31 = vector.load %arg10[%c0_12, %c0_13, %c0_14] : memref<1x32x96xbf16, #tpu.memory_space<vmem>>, vector<1x32x96xbf16>
    %32 = vector.shape_cast %31 : vector<1x32x96xbf16> to vector<32x96xbf16>
    %cst_15 = arith.constant dense<0.000000e+00> : vector<48x96xf32>
    %33 = tpu.matmul %30, %32, %cst_15 {dimension_numbers = #tpu.dot_dimension_numbers<[1], [0], [0], [1], [0, 0, 1, 1], [], []>} : vector<48x32xbf16>, vector<32x96xbf16>, vector<48x96xf32> -> vector<48x96xf32>
    %34 = vector.extract_strided_slice %33 {offsets = [0, 0], sizes = [48, 32], strides = [1, 1]} : vector<48x96xf32> to vector<48x32xf32>
    %35 = vector.shape_cast %34 : vector<48x32xf32> to vector<6x8x32xf32>
    %36 = arith.truncf %35 : vector<6x8x32xf32> to vector<6x8x32xbf16>
    %37 = vector.extract_strided_slice %33 {offsets = [0, 32], sizes = [48, 32], strides = [1, 1]} : vector<48x96xf32> to vector<48x32xf32>
    %38 = vector.shape_cast %37 : vector<48x32xf32> to vector<6x8x32xf32>
    %39 = arith.truncf %38 : vector<6x8x32xf32> to vector<6x8x32xbf16>
    %40 = vector.extract_strided_slice %33 {offsets = [0, 64], sizes = [48, 32], strides = [1, 1]} : vector<48x96xf32> to vector<48x32xf32>
    %41 = vector.shape_cast %40 : vector<48x32xf32> to vector<6x8x32xf32>
    %42 = arith.truncf %41 : vector<6x8x32xf32> to vector<6x8x32xbf16>
    "tpu.trace_start"() <{level = 10 : i32, message = "gtd,gsd->gts"}> : () -> ()
    %cst_16 = arith.constant dense<0.000000e+00> : vector<6x8x8xf32>
    %43 = tpu.matmul %36, %39, %cst_16 {dimension_numbers = #tpu.dot_dimension_numbers<[2], [2], [1], [1], [0, 0, 0, 1, 1, 1], [0], [0]>} : vector<6x8x32xbf16>, vector<6x8x32xbf16>, vector<6x8x8xf32> -> vector<6x8x8xf32>
    "tpu.trace_stop"() : () -> ()
    %cst_17 = arith.constant 0.176776692 : f32
    %44 = vector.broadcast %cst_17 : f32 to vector<6x8x8xf32>
    %45 = arith.mulf %43, %44 : vector<6x8x8xf32>
    %46 = tpu.iota {dimensions = array<i32: 2>} : vector<1x1x8xi32>
    %c5_i32 = arith.constant 5 : i32
    %47 = vector.broadcast %c5_i32 : i32 to vector<1x1x8xi32>
    %48 = arith.cmpi slt, %46, %47 : vector<1x1x8xi32>
    %cst_18 = arith.constant 0.000000e+00 : f32
    %cst_19 = arith.constant -1.000000e+30 : f32
    %49 = vector.broadcast %cst_18 : f32 to vector<1x1x8xf32>
    %50 = vector.broadcast %cst_19 : f32 to vector<1x1x8xf32>
    %51 = arith.select %48, %49, %50 : vector<1x1x8xi1>, vector<1x1x8xf32>
    %52 = vector.broadcast %51 : vector<1x1x8xf32> to vector<6x8x8xf32>
    %53 = arith.addf %45, %52 : vector<6x8x8xf32>
    %cst_20 = arith.constant dense<0xFF800000> : vector<6x8xf32>
    %54 = vector.multi_reduction <maximumf>, %53, %cst_20 [2] : vector<6x8x8xf32> to vector<6x8xf32>
    %55 = vector.shape_cast %54 : vector<6x8xf32> to vector<6x8x1xf32>
    %56 = vector.broadcast %55 : vector<6x8x1xf32> to vector<6x8x8xf32>
    %57 = arith.subf %53, %56 : vector<6x8x8xf32>
    %58 = math.exp %57 : vector<6x8x8xf32>
    %cst_21 = arith.constant dense<0.000000e+00> : vector<6x8xf32>
    %59 = vector.multi_reduction <add>, %58, %cst_21 [2] : vector<6x8x8xf32> to vector<6x8xf32>
    %60 = vector.shape_cast %59 : vector<6x8xf32> to vector<6x8x1xf32>
    %61 = tpu.reciprocal %60 {approx = true} : vector<6x8x1xf32> -> vector<6x8x1xf32>
    %62 = vector.broadcast %61 : vector<6x8x1xf32> to vector<6x8x8xf32>
    %63 = arith.mulf %58, %62 : vector<6x8x8xf32>
    %64 = arith.truncf %63 : vector<6x8x8xf32> to vector<6x8x8xbf16>
    "tpu.trace_start"() <{level = 10 : i32, message = "gts,gsd->gtd"}> : () -> ()
    %cst_22 = arith.constant dense<0.000000e+00> : vector<6x8x32xf32>
    %65 = tpu.matmul %64, %42, %cst_22 {dimension_numbers = #tpu.dot_dimension_numbers<[2], [1], [1], [2], [0, 0, 0, 1, 1, 2], [0], [0]>} : vector<6x8x8xbf16>, vector<6x8x32xbf16>, vector<6x8x32xf32> -> vector<6x8x32xf32>
    "tpu.trace_stop"() : () -> ()
    %66 = vector.shape_cast %65 : vector<6x8x32xf32> to vector<48x32xf32>
    %67 = arith.truncf %66 : vector<48x32xf32> to vector<48x32xbf16>
    %c0_23 = arith.constant 0 : index
    %c0_24 = arith.constant 0 : index
    %c0_25 = arith.constant 0 : index
    %68 = vector.load %arg11[%c0_23, %c0_24, %c0_25] : memref<1x32x32xbf16, #tpu.memory_space<vmem>>, vector<1x32x32xbf16>
    %69 = vector.shape_cast %68 : vector<1x32x32xbf16> to vector<32x32xbf16>
    %cst_26 = arith.constant dense<0.000000e+00> : vector<48x32xf32>
    %70 = tpu.matmul %67, %69, %cst_26 {dimension_numbers = #tpu.dot_dimension_numbers<[1], [0], [0], [1], [0, 0, 1, 1], [], []>} : vector<48x32xbf16>, vector<32x32xbf16>, vector<48x32xf32> -> vector<48x32xf32>
    %71 = arith.addf %3, %70 : vector<48x32xf32>
    %c0_27 = arith.constant 0 : index
    %c0_28 = arith.constant 0 : index
    %c0_29 = arith.constant 0 : index
    %72 = vector.load %arg12[%c0_27, %c0_28, %c0_29] : memref<1x1x32xf32, #tpu.memory_space<vmem>>, vector<1x1x32xf32>
    %73 = vector.shape_cast %72 : vector<1x1x32xf32> to vector<1x32xf32>
    %c0_30 = arith.constant 0 : index
    %c0_31 = arith.constant 0 : index
    %c0_32 = arith.constant 0 : index
    %74 = vector.load %arg13[%c0_30, %c0_31, %c0_32] : memref<1x1x32xf32, #tpu.memory_space<vmem>>, vector<1x1x32xf32>
    %75 = vector.shape_cast %74 : vector<1x1x32xf32> to vector<1x32xf32>
    %cst_33 = arith.constant dense<0.000000e+00> : vector<48xf32>
    %76 = vector.multi_reduction <add>, %71, %cst_33 [1] : vector<48x32xf32> to vector<48xf32>
    %77 = vector.shape_cast %76 : vector<48xf32> to vector<48x1xf32>
    %cst_34 = arith.constant 3.200000e+01 : f32
    %78 = vector.broadcast %cst_34 : f32 to vector<48x1xf32>
    %79 = arith.divf %77, %78 : vector<48x1xf32>
    %80 = vector.broadcast %79 : vector<48x1xf32> to vector<48x32xf32>
    %81 = arith.subf %71, %80 : vector<48x32xf32>
    %82 = arith.mulf %81, %81 : vector<48x32xf32>
    %cst_35 = arith.constant dense<0.000000e+00> : vector<48xf32>
    %83 = vector.multi_reduction <add>, %82, %cst_35 [1] : vector<48x32xf32> to vector<48xf32>
    %84 = vector.shape_cast %83 : vector<48xf32> to vector<48x1xf32>
    %cst_36 = arith.constant 3.200000e+01 : f32
    %85 = vector.broadcast %cst_36 : f32 to vector<48x1xf32>
    %86 = arith.divf %84, %85 : vector<48x1xf32>
    %87 = vector.broadcast %79 : vector<48x1xf32> to vector<48x32xf32>
    %88 = arith.subf %71, %87 : vector<48x32xf32>
    %cst_37 = arith.constant 9.99999974E-6 : f32
    %89 = vector.broadcast %cst_37 : f32 to vector<48x1xf32>
    %90 = arith.addf %86, %89 : vector<48x1xf32>
    %91 = math.rsqrt %90 : vector<48x1xf32>
    %92 = vector.broadcast %91 : vector<48x1xf32> to vector<48x32xf32>
    %93 = arith.mulf %88, %92 : vector<48x32xf32>
    %94 = vector.broadcast %73 : vector<1x32xf32> to vector<48x32xf32>
    %95 = arith.mulf %93, %94 : vector<48x32xf32>
    %96 = vector.broadcast %75 : vector<1x32xf32> to vector<48x32xf32>
    %97 = arith.addf %95, %96 : vector<48x32xf32>
    %98 = arith.truncf %97 : vector<48x32xf32> to vector<48x32xbf16>
    %c0_38 = arith.constant 0 : index
    %c0_39 = arith.constant 0 : index
    %c0_40 = arith.constant 0 : index
    %99 = vector.load %arg14[%c0_38, %c0_39, %c0_40] : memref<1x32x128xbf16, #tpu.memory_space<vmem>>, vector<1x32x128xbf16>
    %100 = vector.shape_cast %99 : vector<1x32x128xbf16> to vector<32x128xbf16>
    %cst_41 = arith.constant dense<0.000000e+00> : vector<48x128xf32>
    %101 = tpu.matmul %98, %100, %cst_41 {dimension_numbers = #tpu.dot_dimension_numbers<[1], [0], [0], [1], [0, 0, 1, 1], [], []>} : vector<48x32xbf16>, vector<32x128xbf16>, vector<48x128xf32> -> vector<48x128xf32>
    %c0_42 = arith.constant 0 : index
    %c0_43 = arith.constant 0 : index
    %c0_44 = arith.constant 0 : index
    %102 = vector.load %arg15[%c0_42, %c0_43, %c0_44] : memref<1x1x128xf32, #tpu.memory_space<vmem>>, vector<1x1x128xf32>
    %103 = vector.shape_cast %102 : vector<1x1x128xf32> to vector<1x128xf32>
    %104 = vector.broadcast %103 : vector<1x128xf32> to vector<48x128xf32>
    %105 = arith.addf %101, %104 : vector<48x128xf32>
    %106 = arith.mulf %105, %105 : vector<48x128xf32>
    %107 = arith.mulf %105, %106 : vector<48x128xf32>
    %cst_45 = arith.constant 4.471500e-02 : f32
    %108 = vector.broadcast %cst_45 : f32 to vector<48x128xf32>
    %109 = arith.mulf %108, %107 : vector<48x128xf32>
    %110 = arith.addf %105, %109 : vector<48x128xf32>
    %cst_46 = arith.constant 0.797884583 : f32
    %111 = vector.broadcast %cst_46 : f32 to vector<48x128xf32>
    %112 = arith.mulf %111, %110 : vector<48x128xf32>
    %113 = math.tanh %112 : vector<48x128xf32>
    %cst_47 = arith.constant 1.000000e+00 : f32
    %114 = vector.broadcast %cst_47 : f32 to vector<48x128xf32>
    %115 = arith.addf %114, %113 : vector<48x128xf32>
    %cst_48 = arith.constant 5.000000e-01 : f32
    %116 = vector.broadcast %cst_48 : f32 to vector<48x128xf32>
    %117 = arith.mulf %116, %115 : vector<48x128xf32>
    %118 = arith.mulf %105, %117 : vector<48x128xf32>
    %119 = arith.truncf %118 : vector<48x128xf32> to vector<48x128xbf16>
    %c0_49 = arith.constant 0 : index
    %c0_50 = arith.constant 0 : index
    %c0_51 = arith.constant 0 : index
    %120 = vector.load %arg16[%c0_49, %c0_50, %c0_51] : memref<1x128x32xbf16, #tpu.memory_space<vmem>>, vector<1x128x32xbf16>
    %121 = vector.shape_cast %120 : vector<1x128x32xbf16> to vector<128x32xbf16>
    %cst_52 = arith.constant dense<0.000000e+00> : vector<48x32xf32>
    %122 = tpu.matmul %119, %121, %cst_52 {dimension_numbers = #tpu.dot_dimension_numbers<[1], [0], [0], [1], [0, 0, 1, 1], [], []>} : vector<48x128xbf16>, vector<128x32xbf16>, vector<48x32xf32> -> vector<48x32xf32>
    %123 = arith.addf %71, %122 : vector<48x32xf32>
    %c0_53 = arith.constant 0 : index
    %c0_54 = arith.constant 0 : index
    %c0_55 = arith.constant 0 : index
    %124 = vector.load %arg17[%c0_53, %c0_54, %c0_55] : memref<1x1x32xf32, #tpu.memory_space<vmem>>, vector<1x1x32xf32>
    %125 = vector.shape_cast %124 : vector<1x1x32xf32> to vector<1x32xf32>
    %126 = vector.broadcast %125 : vector<1x32xf32> to vector<48x32xf32>
    %127 = arith.addf %123, %126 : vector<48x32xf32>
    %c0_56 = arith.constant 0 : index
    %c0_57 = arith.constant 0 : index
    %128 = vector.load %arg21[%c0_56, %c0_57] : memref<48x32xf32, #tpu.memory_space<vmem>>, vector<48x32xf32>
    tpu.vector_store %arg21[%c0_56, %c0_57], %127 {strides = array<i32>} : memref<48x32xf32, #tpu.memory_space<vmem>>, vector<48x32xf32>,
    %c1_i32 = arith.constant 1 : i32
    %129 = arith.cmpi eq, %arg1, %c1_i32 : i32
    %130 = arith.extui %129 : i1 to i32
    %c0_i32_58 = arith.constant 0 : i32
    %131 = arith.cmpi ne, %130, %c0_i32_58 : i32
    scf.if %131 {
      %132 = vector.shape_cast %127 : vector<48x32xf32> to vector<6x8x32xf32>
      %133 = vector.extract_strided_slice %132 {offsets = [0, 0, 0], sizes = [6, 1, 32], strides = [1, 1, 1]} : vector<6x8x32xf32> to vector<6x1x32xf32>
      %134 = vector.shape_cast %133 : vector<6x1x32xf32> to vector<6x32xf32>
      %135 = vector.extract_strided_slice %134 {offsets = [0, 0], sizes = [2, 32], strides = [1, 1]} : vector<6x32xf32> to vector<2x32xf32>
      %136 = vector.extract_strided_slice %134 {offsets = [2, 0], sizes = [2, 32], strides = [1, 1]} : vector<6x32xf32> to vector<2x32xf32>
      %137 = tpu.concatenate %135, %136 in 1 : vector<2x32xf32>, vector<2x32xf32> -> vector<2x64xf32>
      %138 = arith.truncf %137 : vector<2x64xf32> to vector<2x64xbf16>
      %c0_59 = arith.constant 0 : index
      %c0_60 = arith.constant 0 : index
      %139 = vector.load %arg18[%c0_59, %c0_60] : memref<64x128xbf16, #tpu.memory_space<vmem>>, vector<64x128xbf16>
      %cst_61 = arith.constant dense<0.000000e+00> : vector<2x128xf32>
      %140 = tpu.matmul %138, %139, %cst_61 {dimension_numbers = #tpu.dot_dimension_numbers<[1], [0], [0], [1], [0, 0, 1, 1], [], []>} : vector<2x64xbf16>, vector<64x128xbf16>, vector<2x128xf32> -> vector<2x128xf32>
      %c0_62 = arith.constant 0 : index
      %c0_63 = arith.constant 0 : index
      %141 = vector.load %arg19[%c0_62, %c0_63] : memref<1x128xf32, #tpu.memory_space<vmem>>, vector<1x128xf32>
      %142 = vector.broadcast %141 : vector<1x128xf32> to vector<2x128xf32>
      %143 = arith.addf %140, %142 : vector<2x128xf32>
      %c0_64 = arith.constant 0 : index
      %c0_65 = arith.constant 0 : index
      %144 = vector.load %arg20[%c0_64, %c0_65] : memref<2x128xf32, #tpu.memory_space<vmem>>, vector<2x128xf32>
      tpu.vector_store %arg20[%c0_64, %c0_65], %143 {strides = array<i32>} : memref<2x128xf32, #tpu.memory_space<vmem>>, vector<2x128xf32>,
    } else {
    }
    return
  }
  func.func @transform_0(%arg0: i32, %arg1: i32) -> (i32, i32, i32) {
    %c0_i32 = arith.constant 0 : i32
    %c0_i32_0 = arith.constant 0 : i32
    %c0_i32_1 = arith.constant 0 : i32
    return %arg0, %c0_i32, %c0_i32_0 : i32, i32, i32
  }
  func.func @transform_1(%arg0: i32, %arg1: i32) -> (i32, i32) {
    %c0_i32 = arith.constant 0 : i32
    %c0_i32_0 = arith.constant 0 : i32
    %c0_i32_1 = arith.constant 0 : i32
    return %c0_i32, %c0_i32_0 : i32, i32
  }
  func.func @transform_2(%arg0: i32, %arg1: i32) -> (i32, i32) {
    %c0_i32 = arith.constant 0 : i32
    %c0_i32_0 = arith.constant 0 : i32
    %c0_i32_1 = arith.constant 0 : i32
    return %c0_i32, %c0_i32_0 : i32, i32
  }
  func.func @transform_3(%arg0: i32, %arg1: i32) -> (i32, i32) {
    %c0_i32 = arith.constant 0 : i32
    %c0_i32_0 = arith.constant 0 : i32
    %c0_i32_1 = arith.constant 0 : i32
    return %c0_i32, %c0_i32_0 : i32, i32
  }
  func.func @transform_4(%arg0: i32, %arg1: i32) -> (i32, i32) {
    %c0_i32 = arith.constant 0 : i32
    %c0_i32_0 = arith.constant 0 : i32
    %c0_i32_1 = arith.constant 0 : i32
    return %c0_i32, %c0_i32_0 : i32, i32
  }
  func.func @transform_5(%arg0: i32, %arg1: i32) -> (i32, i32) {
    %c0_i32 = arith.constant 0 : i32
    %c0_i32_0 = arith.constant 0 : i32
    %c0_i32_1 = arith.constant 0 : i32
    return %c0_i32, %c0_i32_0 : i32, i32
  }
  func.func @transform_6(%arg0: i32, %arg1: i32) -> (i32, i32, i32) {
    %c0_i32 = arith.constant 0 : i32
    %c0_i32_0 = arith.constant 0 : i32
    %c0_i32_1 = arith.constant 0 : i32
    return %arg1, %c0_i32, %c0_i32_0 : i32, i32, i32
  }
  func.func @transform_7(%arg0: i32, %arg1: i32) -> (i32, i32, i32) {
    %c0_i32 = arith.constant 0 : i32
    %c0_i32_0 = arith.constant 0 : i32
    %c0_i32_1 = arith.constant 0 : i32
    return %arg1, %c0_i32, %c0_i32_0 : i32, i32, i32
  }
  func.func @transform_8(%arg0: i32, %arg1: i32) -> (i32, i32, i32) {
    %c0_i32 = arith.constant 0 : i32
    %c0_i32_0 = arith.constant 0 : i32
    %c0_i32_1 = arith.constant 0 : i32
    return %arg1, %c0_i32, %c0_i32_0 : i32, i32, i32
  }
  func.func @transform_9(%arg0: i32, %arg1: i32) -> (i32, i32, i32) {
    %c0_i32 = arith.constant 0 : i32
    %c0_i32_0 = arith.constant 0 : i32
    %c0_i32_1 = arith.constant 0 : i32
    return %arg1, %c0_i32, %c0_i32_0 : i32, i32, i32
  }
  func.func @transform_10(%arg0: i32, %arg1: i32) -> (i32, i32, i32) {
    %c0_i32 = arith.constant 0 : i32
    %c0_i32_0 = arith.constant 0 : i32
    %c0_i32_1 = arith.constant 0 : i32
    return %arg1, %c0_i32, %c0_i32_0 : i32, i32, i32
  }
  func.func @transform_11(%arg0: i32, %arg1: i32) -> (i32, i32, i32) {
    %c0_i32 = arith.constant 0 : i32
    %c0_i32_0 = arith.constant 0 : i32
    %c0_i32_1 = arith.constant 0 : i32
    return %arg1, %c0_i32, %c0_i32_0 : i32, i32, i32
  }
  func.func @transform_12(%arg0: i32, %arg1: i32) -> (i32, i32, i32) {
    %c0_i32 = arith.constant 0 : i32
    %c0_i32_0 = arith.constant 0 : i32
    %c0_i32_1 = arith.constant 0 : i32
    return %arg1, %c0_i32, %c0_i32_0 : i32, i32, i32
  }
  func.func @transform_13(%arg0: i32, %arg1: i32) -> (i32, i32, i32) {
    %c0_i32 = arith.constant 0 : i32
    %c0_i32_0 = arith.constant 0 : i32
    %c0_i32_1 = arith.constant 0 : i32
    return %arg1, %c0_i32, %c0_i32_0 : i32, i32, i32
  }
  func.func @transform_14(%arg0: i32, %arg1: i32) -> (i32, i32, i32) {
    %c0_i32 = arith.constant 0 : i32
    %c0_i32_0 = arith.constant 0 : i32
    %c0_i32_1 = arith.constant 0 : i32
    return %arg1, %c0_i32, %c0_i32_0 : i32, i32, i32
  }
  func.func @transform_15(%arg0: i32, %arg1: i32) -> (i32, i32, i32) {
    %c0_i32 = arith.constant 0 : i32
    %c0_i32_0 = arith.constant 0 : i32
    %c0_i32_1 = arith.constant 0 : i32
    return %arg1, %c0_i32, %c0_i32_0 : i32, i32, i32
  }
  func.func @transform_16(%arg0: i32, %arg1: i32) -> (i32, i32) {
    %c0_i32 = arith.constant 0 : i32
    %c0_i32_0 = arith.constant 0 : i32
    %c0_i32_1 = arith.constant 0 : i32
    return %c0_i32, %c0_i32_0 : i32, i32
  }
  func.func @transform_17(%arg0: i32, %arg1: i32) -> (i32, i32) {
    %c0_i32 = arith.constant 0 : i32
    %c0_i32_0 = arith.constant 0 : i32
    %c0_i32_1 = arith.constant 0 : i32
    return %c0_i32, %c0_i32_0 : i32, i32
  }
  func.func @transform_18(%arg0: i32, %arg1: i32) -> (i32, i32) {
    %c0_i32 = arith.constant 0 : i32
    %c0_i32_0 = arith.constant 0 : i32
    return %arg0, %c0_i32 : i32, i32
  }
}

</mosaic_0001>

<bundles_post_ra>
// kernel: tpu_custom_call.1
= control target key start
LH: loop header
LB: loop body
LE: loop exit
PB: predicated region body
PF: predicated region fallthrough
CT: control target
= control target key end

     0   :  { %s3562_s0 = inlined_call_operand.vmem [shape: f32[2,4,16], index: 0, kind: input, shape index: {}]   ;;  %s3563_s1 = inlined_call_operand.vmem [shape: bf16[16,32], index: 1, kind: input, shape index: {}]   ;;  %s3564_s2 = inlined_call_operand.vmem [shape: f32[1,32], index: 2, kind: input, shape index: {}]   ;;  %s3565_s3 = inlined_call_operand.vmem [shape: f32[1,32], index: 3, kind: input, shape index: {}]   ;;  %s3566_s4 = inlined_call_operand.vmem [shape: f32[1,32], index: 4, kind: input, shape index: {}]   ;;  %s3567_s5 = inlined_call_operand.vmem [shape: f32[3,32], index: 5, kind: input, shape index: {}]   ;;  %s3568_s6 = inlined_call_operand.vmem [shape: f32[2,1,32], index: 6, kind: input, shape index: {}]   ;;  %s3569_s7 = inlined_call_operand.vmem [shape: f32[2,1,32], index: 7, kind: input, shape index: {}]   ;;  %s3570_s8 = inlined_call_operand.vmem [shape: bf16[2,32,96], index: 8, kind: input, shape index: {}]   ;;  %s3571_s9 = inlined_call_operand.vmem [shape: bf16[2,32,32], index: 9, kind: input, shape index: {}]   ;;  %s3572_s10 = inlined_call_operand.vmem [shape: f32[2,1,32], index: 10, kind: input, shape index: {}]   ;;  %s3573_s11 = inlined_call_operand.vmem [shape: f32[2,1,32], index: 11, kind: input, shape index: {}]   ;;  %s3574_s12 = inlined_call_operand.vmem [shape: bf16[2,32,128], index: 12, kind: input, shape index: {}]   ;;  %s3575_s13 = inlined_call_operand.vmem [shape: f32[2,1,128], index: 13, kind: input, shape index: {}]   ;;  %s3576_s14 = inlined_call_operand.vmem [shape: bf16[2,128,32], index: 14, kind: input, shape index: {}]   ;;  %s3577_s15 = inlined_call_operand.vmem [shape: f32[2,1,32], index: 15, kind: input, shape index: {}]   ;;  %s3578_s16 = inlined_call_operand.vmem [shape: bf16[64,128], index: 16, kind: input, shape index: {}]   ;;  %s3579_s17 = inlined_call_operand.vmem [shape: f32[1,128], index: 17, kind: input, shape index: {}]   ;;  %s3580_s18 = inlined_call_operand.hbm [shape: f32[2,128], index: 18, kind: output, shape index: {}]  }
   0x1   :  { %3584 = sst [smem:[#allocation9_spill]] %s3562_s0 }
   0x2   :  { %3585 = sst [smem:[#allocation10_spill]] %s3563_s1 }
   0x3   :  { %3586 = sst [smem:[#allocation11_spill]] %s3564_s2 }
   0x4   :  { %3587 = sst [smem:[#allocation12_spill]] %s3570_s8 }
   0x5   :  { %3588 = sst [smem:[#allocation13_spill]] %s3571_s9 }
   0x6   :  { %3589 = sst [smem:[#allocation14_spill]] %s3578_s16 }
   0x7   :  { %3590 = sst [smem:[#allocation15_spill]] %s3579_s17 }
   0x8   :  { %3591 = sst [smem:[#allocation16_spill]] %s3580_s18 }
   0x9   :  { %23 = vsyncpa [#allocation4], 0  ;;  %s3090_s27 = smov 0   ;;  %s3092_s28 = smov 0  }
   0xa   :  { %s3094_s29 = smov 0  }
   0xb LB: > { %3592 = sst [smem:[#allocation6_spill]] %s2978_s28  ;;  %s38_s0 = sadd.s32 1, %s2978_s28  ;;  %s2982_s29 = sphi %s3094_s29, %s29_s29   ;;  %s2978_s28 = sphi %s3092_s28, %s3611_s28   ;;  %s2974_s27 = sphi %s3090_s27, %s3610_s27  }
   0xc   : > { %3593 = sst [smem:[#allocation7_spill]] %s2982_s29  ;;  %p39_p0 = scmp.ge.s32.totalorder %s38_s0, 2 }
   0xd   : > { %p2515_p1 = scmp.ge.s32.totalorder %s2982_s29, 1  ;;  %p614_p2 = scmp.lt.s32.totalorder %s2982_s29, 3 }
   0xe   : > { %s3613_s0 = smov (%p39_p0, %s38_s0), 0 }
   0xf   : > { %3594 = sst [smem:[#allocation8_spill]] %s3613_s0  ;;  %p615_p3 = pnand %p2515_p1, %p614_p2 }
  0x10   : > { %p707_p4 = scmp.lt.s32.totalorder (!%p615_p3), %s2974_s27, 1  ;;  %s3595_s8 = sld [smem:[#allocation12_spill]] (!%p615_p3) }
  0x11   : > { %618 = sbr.rel (%p615_p3) target bundleno = 3240 (0xca8), region = 92  ;;  %s3596_s9 = sld [smem:[#allocation13_spill]] (!%p615_p3) }
  0x12   : > { %p2524_p5 = scmp.ne.s32.totalorder (!%p615_p3), %s2974_s27, 0 }
  0x16   : > { %s3113_s19 = scalar_select %p707_p4, %s2974_s27, 1 }
  0x17   : > { %s3598_s26 = sld [smem:[#allocation9_spill]] (!%p2524_p5) }
  0x18   : > { %s2582_s24 = sshll.u32 %s3113_s19, 4  ;;  %s728_s22 = scalar_lea.vmem %s3573_s11, %s3113_s19 }
  0x19   : > { %s3131_s1 = scalar_lea.vmem %s3595_s8, %s2582_s24  ;;  %s3136_s29 = scalar_lea.vmem %s3596_s9, %s2582_s24 }
  0x1a   : > { %s3145_s16 = scalar_lea.vmem %s3574_s12, %s2582_s24  ;;  %s736_s28 = scalar_lea.vmem %s3575_s13, %s3113_s19 }
  0x1b   : > { %s2585_s0 = sshll.u32 %s3113_s19, 6  ;;  %s744_s17 = scalar_lea.vmem %s3577_s15, %s3113_s19 }
  0x1c   : > { %s3155_s18 = scalar_lea.vmem %s3576_s14, %s2585_s0  ;;  %749 = sbr.rel (%p2524_p5) target bundleno = 550 (0x226), region = 96 }
  0x1d   : > { %s3597_s24 = sld [smem:[#allocation10_spill]] (!%p2524_p5) }
  0x1e   : > { %s3599_s30 = sld [smem:[#allocation11_spill]] (!%p2524_p5) }
  0x21   : > { %v2984_v1 = vmov 0.0   ;;  %v2851_v2 = vld [vmem:[%s3598_s26] sm:$0xff]   ;;  %vm2985_vm0 = vmmov 0   ;;  %vm772_vm1 = vcmask 130048   ;;  %vm818_vm2 = vcmask 261120  }
  0x22   : > { %2643 = vmatprep.subr.bf16.mxu0 %v2984_v1  ;;  %2645 = vmatprep.mubr.msk.bf16.mxu0 %vm2985_vm0, %v2984_v1  ;;  %v756_v3 = vpack.c.bf16 %v2851_v2, %v2851_v2  ;;  %v2528_v20 = vld [vmem:[%s3565_s3] ss:$0 sm:$0xff]  ;;  %vm854_vm3 = vcmask 1040384   ;;  %vm857_vm4 = vcmask 1044480  }
  0x23   : > { %v2850_v0 = vld [vmem:[%s3597_s24] sm:$0xff]  }
  0x24   : > { %2644 = vmatpush3.bf16.msra.mxu0 %v2850_v0  ;;  %v2525_v4 = vld [vmem:[%s3599_s30] ss:$0 sm:$0xff] }
  0x25   : > { %v2529_v22 = vld [vmem:[%s3566_s4] ss:$0 sm:$0xff] }
  0x26   : > { %v849_v23 = vld [vmem:[%s3567_s5] sm:$0x7] }
  0x27   : > { %2646 = vmatmul.mubr.msk.bf16.vlgmr.msra.gmra.mxu0 %vm772_vm1, %v756_v3  ;;  %v861_v25 = vrot.slane %v849_v23, 1  ;;  %v867_v26 = vrot.slane %v849_v23, 2 }
  0xe7   : > { %v810_v5 = vpop.f32.mrf.mxu0 }
  0xe8   : > { %v811_v6 = vadd.f32 %v2525_v4, %v810_v5 }
  0xe9   : > { %v2647_v7 = vpop.f32.mrf.mxu0 }
  0xea   : > { %v819_v8 = vsel %vm818_vm2, %v811_v6, 0.0 }
  0xeb   : > { %820 = vadd.xlane.f32.xlu0 %v819_v8  ;;  %v813_v9 = vpop.f32.mrf.mxu0 }
  0xed   : > { %v2648_v10 = vpop.f32.mrf.mxu0 }
 0x174   : > { %v821_v11 = vpop.xlane.xlu0 %820 }
 0x175   : > { %v823_v12 = vmul.f32 0.03125, %v821_v11 }
 0x177   : > { %v824_v13 = vsub.f32 %v811_v6, %v823_v12 }
 0x179   : > { %v825_v14 = vmul.f32 %v824_v13, %v824_v13 }
 0x17b   : > { %v826_v15 = vsel %vm818_vm2, %v825_v14, 0.0 }
 0x17c   : > { %827 = vadd.xlane.f32.xlu0 %v826_v15 }
 0x205   : > { %v828_v16 = vpop.xlane.xlu0 %827 }
 0x206   : > { %v829_v17 = vmul.f32 0.03125, %v828_v16 }
 0x208   : > { %v830_v18 = vadd.f32 1e-05, %v829_v17 }
 0x20a   : > { %2852 = vrsqrt.f32 %v830_v18 }
 0x217   : > { %v2853_v19 = vpop.eup %2852 }
 0x218   : > { %v832_v21 = vmul.f32 %v2853_v19, %v824_v13 }
 0x21a   : > { %v839_v24 = vmul.f32 %v2528_v20, %v832_v21 }
 0x21c   : > { %v846_v27 = vadd.f32 %v2529_v22, %v839_v24 }
 0x21e   : > { %v848_v28 = vcombine.high %v846_v27, %v846_v27  ;;  %v850_v29 = vrot.slane %v846_v27, 7 }
 0x220   : > { %v851_v30 = vrot.slane %v848_v28, 7  ;;  %v855_v31 = vsel %vm854_vm3, %v849_v23, %v850_v29  ;;  %v863_v32 = vsel %vm854_vm3, %v861_v25, %v850_v29  ;;  %v869_v33 = vsel %vm854_vm3, %v867_v26, %v850_v29 }
 0x221   : > { %v858_v34 = vsel %vm857_vm4, %v855_v31, 0.0  ;;  %v865_v35 = vsel %vm857_vm4, %v863_v32, 0.0  ;;  %v871_v36 = vsel %vm857_vm4, %v869_v33, 0.0 }
 0x222   : > { %v856_v37 = vsel %vm854_vm3, %v849_v23, %v851_v30  ;;  %v864_v38 = vsel %vm854_vm3, %v861_v25, %v851_v30  ;;  %v870_v39 = vsel %vm854_vm3, %v867_v26, %v851_v30  ;;  %873 = vst.msk [vmem:[#allocation2] sm:$0xff] %vm818_vm2, %v858_v34  ;;  %875 = vst.msk [vmem:[#allocation2 + $0x10] sm:$0xff] %vm818_vm2, %v865_v35 }
 0x223   : > { %877 = vst.msk [vmem:[#allocation2 + $0x20] sm:$0xff] %vm818_vm2, %v871_v36  ;;  %v859_v40 = vsel %vm857_vm4, %v856_v37, 0.0  ;;  %v866_v41 = vsel %vm857_vm4, %v864_v38, 0.0  ;;  %v872_v42 = vsel %vm857_vm4, %v870_v39, 0.0 }
 0x224   : > { %874 = vst.msk [vmem:[#allocation2 + $0x8] sm:$0xff] %vm818_vm2, %v859_v40  ;;  %876 = vst.msk [vmem:[#allocation2 + $0x18] sm:$0xff] %vm818_vm2, %v866_v41 }
 0x225   : > { %878 = vst.msk [vmem:[#allocation2 + $0x28] sm:$0xff] %vm818_vm2, %v872_v42 }
 0x226 PF: > { %vm887_vm5 = vcmask 261120   ;;  %v2854_v21 = vld [vmem:[%s3131_s1 + $0x8] sm:$0xff]   ;;  %v2986_v22 = vmov 0.0   ;;  %vm2987_vm6 = vmmov 0   ;;  %v2855_v23 = vld [vmem:[%s3131_s1] sm:$0xff]   ;;  %s3600_s26 = scalar_lea.vmem %s3568_s6, %s3113_s19  ;;  %s3601_s30 = scalar_lea.vmem %s3569_s7, %s3113_s19  ;;  %vm1392_vm8 = vcmask 64512  }
 0x227   : > { %2649 = vmatprep.subr.bf16.mxu0 %v2986_v22  ;;  %2653 = vmatprep.mubr.msk.bf16.mxu0 %vm2987_vm6, %v2986_v22  ;;  %s2988_s0 = smov 96   ;;  %s2990_s20 = smov 64   ;;  %vm1470_vm9 = vcmask 1043456  }
 0x228   : > { %2650 = vmatpush3.bf16.msra.mxu0 %v2854_v21  ;;  %2671 = vmatprep.subr.bf16.mxu1 %v2986_v22  ;;  %s3602_s21 = scalar_lea.vmem %s3572_s10, %s3113_s19  ;;  %p2571_p6 = scmp.ne.s32.totalorder %s2974_s27, 1 }
 0x229   : > { %v3194_v43 = vld [vmem:[#allocation2] sm:$0xff]  ;;  %v3196_v44 = vld [vmem:[#allocation2 + $0x10] sm:$0xff]  ;;  %2651 = vmatprep.subr.bf16.mxu0 %v2986_v22  ;;  %2673 = vmatprep.mubr.msk.bf16.mxu1 %vm2987_vm6, %v2986_v22  ;;  %s3603_s1 = sld [smem:[#allocation14_spill]] (!%p2571_p6)  ;;  %s2992_s25 = smov (!%p2571_p6), 32  }
 0x22a   : > { %v888_v46 = vsel %vm887_vm5, %v3194_v43, 0.0  ;;  %v894_v47 = vsel %vm887_vm5, %v3196_v44, 0.0  ;;  %v3206_v49 = vld [vmem:[#allocation2 + $0x20] sm:$0xff] }
 0x22b   : > { %v3198_v45 = vld [vmem:[#allocation2 + $0x8] sm:$0xff]  ;;  %v3204_v48 = vld [vmem:[#allocation2 + $0x18] sm:$0xff]  ;;  %889 = vadd.xlane.f32.xlu0 %v888_v46  ;;  %895 = vadd.xlane.f32.xlu1 %v894_v47  ;;  %v900_v53 = vsel %vm887_vm5, %v3206_v49, 0.0  ;;  %v2530_v47 = vld [vmem:[%s3600_s26] ss:$0 sm:$0xff] }
 0x22c   : > { %v3208_v50 = vld [vmem:[#allocation2 + $0x28] sm:$0xff]  ;;  %v891_v51 = vsel %vm887_vm5, %v3198_v45, 0.0  ;;  %v897_v52 = vsel %vm887_vm5, %v3204_v48, 0.0  ;;  %2652 = vmatpush3.bf16.msra.mxu0 %v2855_v23 }
 0x22d   : > { %v903_v54 = vsel %vm887_vm5, %v3208_v50, 0.0  ;;  %2665 = vmatprep.subr.bf16.mxu0 %v2986_v22 }
 0x22f   : > { %892 = vadd.xlane.f32.xlu0 %v891_v51  ;;  %898 = vadd.xlane.f32.xlu1 %v897_v52 }
 0x233   : > { %901 = vadd.xlane.f32.xlu0 %v900_v53  ;;  %904 = vadd.xlane.f32.xlu1 %v903_v54 }
 0x2b4   : > { %v890_v55 = vpop.xlane.xlu0 %889  ;;  %v896_v56 = vpop.xlane.xlu1 %895 }
 0x2b5   : > { %v907_v57 = vmul.f32 0.03125, %v890_v55  ;;  %v909_v58 = vmul.f32 0.03125, %v896_v56  ;;  %v2531_v55 = vld [vmem:[%s3601_s30] ss:$0 sm:$0xff] }
 0x2b7   : > { %v3219_v59 = vsub.f32 %v3194_v43, %v907_v57  ;;  %v3222_v60 = vsub.f32 %v3196_v44, %v909_v58 }
 0x2b8   : > { %v893_v61 = vpop.xlane.xlu0 %892  ;;  %v899_v62 = vpop.xlane.xlu1 %898 }
 0x2b9   : > { %v908_v63 = vmul.f32 0.03125, %v893_v61  ;;  %v910_v0 = vmul.f32 0.03125, %v899_v62  ;;  %v919_v1 = vmul.f32 %v3219_v59, %v3219_v59  ;;  %v921_v2 = vmul.f32 %v3222_v60, %v3222_v60 }
 0x2bb   : > { %v3229_v3 = vsub.f32 %v3198_v45, %v908_v63  ;;  %v3232_v4 = vsub.f32 %v3204_v48, %v910_v0  ;;  %v925_v5 = vsel %vm887_vm5, %v919_v1, 0.0  ;;  %v931_v8 = vsel %vm887_vm5, %v921_v2, 0.0 }
 0x2bc   : > { %926 = vadd.xlane.f32.xlu0 %v925_v5  ;;  %v902_v6 = vpop.xlane.xlu0 %901  ;;  %v905_v7 = vpop.xlane.xlu1 %904 }
 0x2bd   : > { %v911_v9 = vmul.f32 0.03125, %v902_v6  ;;  %v912_v10 = vmul.f32 0.03125, %v905_v7  ;;  %v920_v11 = vmul.f32 %v3229_v3, %v3229_v3  ;;  %v922_v12 = vmul.f32 %v3232_v4, %v3232_v4 }
 0x2bf   : > { %v3241_v13 = vsub.f32 %v3206_v49, %v911_v9  ;;  %v3244_v14 = vsub.f32 %v3208_v50, %v912_v10  ;;  %v928_v15 = vsel %vm887_vm5, %v920_v11, 0.0  ;;  %v934_v16 = vsel %vm887_vm5, %v922_v12, 0.0 }
 0x2c0   : > { %932 = vadd.xlane.f32.xlu0 %v931_v8  ;;  %929 = vadd.xlane.f32.xlu1 %v928_v15 }
 0x2c1   : > { %v923_v17 = vmul.f32 %v3241_v13, %v3241_v13  ;;  %v924_v18 = vmul.f32 %v3244_v14, %v3244_v14 }
 0x2c3   : > { %v937_v19 = vsel %vm887_vm5, %v923_v17, 0.0  ;;  %v940_v20 = vsel %vm887_vm5, %v924_v18, 0.0 }
 0x2c4   : > { %935 = vadd.xlane.f32.xlu1 %v934_v16  ;;  %938 = vadd.xlane.f32.xlu0 %v937_v19 }
 0x2c8   : > { %941 = vadd.xlane.f32.xlu1 %v940_v20 }
 0x345   : > { %v927_v24 = vpop.xlane.xlu0 %926 }
 0x346   : > { %v943_v25 = vmul.f32 0.03125, %v927_v24 }
 0x348   : > { %v949_v26 = vadd.f32 1e-05, %v943_v25 }
 0x349   : > { %v930_v27 = vpop.xlane.xlu1 %929  ;;  %v933_v28 = vpop.xlane.xlu0 %932 }
 0x34a   : > { %2868 = vrsqrt.f32 %v949_v26  ;;  %v944_v29 = vmul.f32 0.03125, %v930_v27  ;;  %v945_v30 = vmul.f32 0.03125, %v933_v28 }
 0x34c   : > { %v950_v31 = vadd.f32 1e-05, %v944_v29  ;;  %v951_v32 = vadd.f32 1e-05, %v945_v30 }
 0x34d   : > { %v936_v33 = vpop.xlane.xlu1 %935  ;;  %v939_v34 = vpop.xlane.xlu0 %938 }
 0x34e   : > { %2870 = vrsqrt.f32 %v950_v31  ;;  %v946_v35 = vmul.f32 0.03125, %v936_v33  ;;  %v947_v37 = vmul.f32 0.03125, %v939_v34 }
 0x34f   : > { %2872 = vrsqrt.f32 %v951_v32 }
 0x350   : > { %v952_v36 = vadd.f32 1e-05, %v946_v35  ;;  %v953_v40 = vadd.f32 1e-05, %v947_v37 }
 0x351   : > { %v942_v38 = vpop.xlane.xlu1 %941 }
 0x352   : > { %2874 = vrsqrt.f32 %v952_v36  ;;  %v948_v39 = vmul.f32 0.03125, %v942_v38 }
 0x354   : > { %v954_v41 = vadd.f32 1e-05, %v948_v39 }
 0x356   : > { %2876 = vrsqrt.f32 %v954_v41 }
 0x357   : > { %v2869_v42 = vpop.eup %2868  ;;  %2878 = vrsqrt.f32 %v953_v40 }
 0x358   : > { %v961_v46 = vmul.f32 %v2869_v42, %v3219_v59 }
 0x35a   : > { %v973_v53 = vmul.f32 %v2530_v47, %v961_v46 }
 0x35b   : > { %v2871_v51 = vpop.eup %2870 }
 0x35c   : > { %v962_v52 = vmul.f32 %v2871_v51, %v3229_v3  ;;  %v2873_v54 = vpop.eup %2872  ;;  %v985_v58 = vadd.f32 %v2531_v55, %v973_v53  ;;  %v2989_v53 = vmov -1e+30  }
 0x35d   : > { %v963_v59 = vmul.f32 %v2873_v54, %v3222_v60 }
 0x35e   : > { %v974_v56 = vmul.f32 %v2530_v47, %v962_v52 }
 0x35f   : > { %v2875_v57 = vpop.eup %2874  ;;  %v975_v2 = vmul.f32 %v2530_v47, %v963_v59 }
 0x360   : > { %v986_v61 = vadd.f32 %v2531_v55, %v974_v56  ;;  %v964_v62 = vmul.f32 %v2875_v57, %v3232_v4 }
 0x361   : > { %v987_v7 = vadd.f32 %v2531_v55, %v975_v2 }
 0x362   : > { %v991_v63 = vpack.c.bf16 %v986_v61, %v985_v58  ;;  %v976_v0 = vmul.f32 %v2530_v47, %v964_v62 }
 0x363   : > { %v2877_v1 = vpop.eup %2876 }
 0x364   : > { %2654 = vmatmul.mubr.msk.bf16.vlgmr.msra.gmra.mxu0 %vm887_vm5, %v991_v63  ;;  %v2879_v3 = vpop.eup %2878  ;;  %v988_v5 = vadd.f32 %v2531_v55, %v976_v0  ;;  %v966_v6 = vmul.f32 %v2877_v1, %v3244_v14 }
 0x365   : > { %2657 = vmatprep.mubr.msk.bf16.mxu0 %vm2987_vm6, %v2986_v22  ;;  %v965_v8 = vmul.f32 %v2879_v3, %v3241_v13 }
 0x366   : > { %v992_v9 = vpack.c.bf16 %v988_v5, %v987_v7  ;;  %v978_v60 = vmul.f32 %v2530_v47, %v966_v6 }
 0x367   : > { %v977_v4 = vmul.f32 %v2530_v47, %v965_v8  ;;  %v1382_v47 = vlaneseq }
 0x368   : > { %v990_v10 = vadd.f32 %v2531_v55, %v978_v60 }
 0x369   : > { %v989_v11 = vadd.f32 %v2531_v55, %v977_v4  ;;  %v1383_v51 = vand.u32 127, %v1382_v47 }
 0x36b   : > { %v993_v12 = vpack.c.bf16 %v990_v10, %v989_v11  ;;  %vm1384_vm7 = vcmp.lt.s32.totalorder %v1383_v51, 5 }
 0x36c   : > { %2658 = vmatmul.mubr.msk.bf16.gmra.mxu0 %vm887_vm5, %v992_v9  ;;  %v1385_v54 = vsel %vm1384_vm7, 0.0, %v2989_v53 }
 0x36d   : > { %2661 = vmatprep.mubr.msk.bf16.mxu0 %vm2987_vm6, %v2986_v22 }
 0x374   : > { %2662 = vmatmul.mubr.msk.bf16.gmra.mxu0 %vm887_vm5, %v993_v12 }
 0x375   : > { %2667 = vmatprep.mubr.msk.bf16.mxu0 %vm2987_vm6, %v2986_v22 }
 0x424   : > { %v1053_v14 = vpop.f32.mrf.mxu0 }
 0x425   : > { %v3289_v15 = vpack.c.bf16 %v1053_v14, %v1053_v14 }
 0x426   : > { %v2655_v13 = vpop.f32.mrf.mxu0 }
 0x427   : > { %1083 = vrot.lane.b32.xlu0 %v3289_v15, %s2988_s0 }
 0x428   : > { %v1056_v16 = vpop.f32.mrf.mxu0 }
 0x429   : > { %v3292_v17 = vpack.c.bf16 %v1056_v16, %v1056_v16 }
 0x42a   : > { %v2656_v18 = vpop.f32.mrf.mxu0 }
 0x42b   : > { %1132 = vrot.lane.b32.xlu1 %v3292_v17, %s2988_s0 }
 0x42c   : > { %v1061_v19 = vpop.f32.mrf.mxu0 }
 0x42d   : > { %v3295_v20 = vpack.c.bf16 %v1061_v19, %v1061_v19 }
 0x42e   : > { %v2659_v21 = vpop.f32.mrf.mxu0 }
 0x42f   : > { %1181 = vrot.lane.b32.xlu1 %v3295_v20, %s2988_s0 }
 0x430   : > { %v1064_v23 = vpop.f32.mrf.mxu0 }
 0x431   : > { %v3298_v24 = vpack.c.bf16 %v1064_v23, %v1064_v23 }
 0x432   : > { %v2660_v25 = vpop.f32.mrf.mxu0 }
 0x433   : > { %1230 = vrot.lane.b32.xlu1 %v3298_v24, %s2988_s0 }
 0x434   : > { %v1069_v26 = vpop.f32.mrf.mxu0 }
 0x435   : > { %v3301_v27 = vpack.c.bf16 %v1069_v26, %v1069_v26 }
 0x436   : > { %v2663_v28 = vpop.f32.mrf.mxu0 }
 0x437   : > { %1279 = vrot.lane.b32.xlu0 %v3301_v27, %s2988_s0 }
 0x438   : > { %v1072_v29 = vpop.f32.mrf.mxu0 }
 0x439   : > { %v3304_v30 = vpack.c.bf16 %v1072_v29, %v1072_v29 }
 0x43a   : > { %v2664_v31 = vpop.f32.mrf.mxu0 }
 0x43b   : > { %1328 = vrot.lane.b32.xlu1 %v3304_v30, %s2988_s0 }
 0x499   : > { %v1084_v32 = vpop.permute.xlu0 %1083 }
 0x49a   : > { %v1089_v33 = vsel %vm887_vm5, %v1084_v32, 0 }
 0x49b   : > { %2666 = vmatpush3.bf16.xpose.msra.mxu0 %v1089_v33 }
 0x49c   : > { %2683 = vmatprep.subr.bf16.mxu0 %v2986_v22 }
 0x49d   : > { %v1133_v34 = vpop.permute.xlu1 %1132 }
 0x49e   : > { %v1138_v35 = vsel %vm887_vm5, %v1133_v34, 0 }
 0x49f   : > { %2672 = vmatpush3.bf16.xpose.msra.mxu1 %v1138_v35 }
 0x4a0   : > { %2677 = vmatprep.subr.bf16.mxu1 %v2986_v22 }
 0x4a1   : > { %v1182_v36 = vpop.permute.xlu1 %1181 }
 0x4a2   : > { %2668 = vmatmul.mubr.msk.bf16.vlgmr.msra.gmra.mxu0 %vm887_vm5, %v3289_v15  ;;  %v1187_v38 = vsel %vm887_vm5, %v1182_v36, 0 }
 0x4a3   : > { %2685 = vmatprep.mubr.msk.bf16.mxu0 %vm2987_vm6, %v2986_v22 }
 0x4a5   : > { %v1231_v37 = vpop.permute.xlu1 %1230 }
 0x4a6   : > { %v1236_v39 = vsel %vm887_vm5, %v1231_v37, 0  ;;  %2674 = vmatmul.mubr.msk.bf16.vlgmr.msra.gmra.mxu1 %vm887_vm5, %v3292_v17 }
 0x4a7   : > { %2678 = vmatpush3.bf16.xpose.msra.mxu1 %v1187_v38  ;;  %2684 = vmatpush3.bf16.xpose.msra.mxu0 %v1236_v39 }
 0x4a8   : > { %2679 = vmatprep.mubr.msk.bf16.mxu1 %vm2987_vm6, %v2986_v22  ;;  %2689 = vmatprep.subr.bf16.mxu1 %v2986_v22 }
 0x4a9   : > { %2695 = vmatprep.subr.bf16.mxu0 %v2986_v22  ;;  %v1280_v40 = vpop.permute.xlu0 %1279 }
 0x4aa   : > { %v1285_v42 = vsel %vm887_vm5, %v1280_v40, 0 }
 0x4ad   : > { %v1329_v41 = vpop.permute.xlu1 %1328 }
 0x4ae   : > { %v1334_v46 = vsel %vm887_vm5, %v1329_v41, 0  ;;  %2680 = vmatmul.mubr.msk.bf16.vlgmr.msra.gmra.mxu1 %vm887_vm5, %v3295_v20  ;;  %2686 = vmatmul.mubr.msk.bf16.vlgmr.msra.gmra.mxu0 %vm887_vm5, %v3298_v24 }
 0x4af   : > { %2690 = vmatpush3.bf16.xpose.msra.mxu1 %v1285_v42  ;;  %2696 = vmatpush3.bf16.xpose.msra.mxu0 %v1334_v46 }
 0x4b0   : > { %2691 = vmatprep.mubr.msk.bf16.mxu1 %vm2987_vm6, %v2986_v22  ;;  %2697 = vmatprep.mubr.msk.bf16.mxu0 %vm2987_vm6, %v2986_v22 }
 0x4b1   : > { %2707 = vmatprep.subr.bf16.mxu0 %v2986_v22  ;;  %2701 = vmatprep.subr.bf16.mxu1 %v2986_v22 }
 0x4b6   : > { %2692 = vmatmul.mubr.msk.bf16.vlgmr.msra.gmra.mxu1 %vm887_vm5, %v3301_v27  ;;  %2698 = vmatmul.mubr.msk.bf16.vlgmr.msra.gmra.mxu0 %vm887_vm5, %v3304_v30 }
 0x4b7   : > { %2703 = vmatprep.mubr.msk.bf16.mxu1 %vm2987_vm6, %v2986_v22  ;;  %2709 = vmatprep.mubr.msk.bf16.mxu0 %vm2987_vm6, %v2986_v22 }
 0x562   : > { %v1125_v52 = vpop.f32.mrf.mxu0 }
 0x563   : > { %v1376_v55 = vmul.f32 0.17677669, %v1125_v52 }
 0x564   : > { %v2669_v56 = vpop.f32.mrf.mxu0 }
 0x565   : > { %v1386_v57 = vadd.f32 %v1385_v54, %v1376_v55 }
 0x566   : > { %v1128_v58 = vpop.f32.mrf.mxu0  ;;  %v1174_v61 = vpop.f32.mrf.mxu1 }
 0x567   : > { %v1377_v59 = vmul.f32 0.17677669, %v1174_v61  ;;  %v1393_v62 = vsel %vm1392_vm8, %v1386_v57, -inf }
 0x568   : > { %v2675_v63 = vpop.f32.mrf.mxu1  ;;  %1394 = vmax.xlane.f32.xlu0 %v1393_v62  ;;  %v2670_v0 = vpop.f32.mrf.mxu0 }
 0x569   : > { %v1387_v1 = vadd.f32 %v1385_v54, %v1377_v59 }
 0x56a   : > { %v1177_v2 = vpop.f32.mrf.mxu1 }
 0x56b   : > { %v1396_v3 = vsel %vm1392_vm8, %v1387_v1, -inf }
 0x56c   : > { %v2676_v5 = vpop.f32.mrf.mxu1  ;;  %1397 = vmax.xlane.f32.xlu1 %v1396_v3 }
 0x56e   : > { %v1223_v6 = vpop.f32.mrf.mxu1  ;;  %v1272_v7 = vpop.f32.mrf.mxu0 }
 0x56f   : > { %v1378_v8 = vmul.f32 0.17677669, %v1223_v6  ;;  %v1379_v9 = vmul.f32 0.17677669, %v1272_v7 }
 0x570   : > { %v2681_v60 = vpop.f32.mrf.mxu1  ;;  %v2687_v4 = vpop.f32.mrf.mxu0 }
 0x571   : > { %v3345_v10 = vadd.f32 %v1385_v54, %v1378_v8  ;;  %v1389_v13 = vadd.f32 %v1385_v54, %v1379_v9 }
 0x572   : > { %v1226_v11 = vpop.f32.mrf.mxu1  ;;  %v1275_v12 = vpop.f32.mrf.mxu0 }
 0x573   : > { %v1399_v14 = vsel %vm1392_vm8, %v3345_v10, -inf  ;;  %v1402_v26 = vsel %vm1392_vm8, %v1389_v13, -inf }
 0x574   : > { %v2682_v16 = vpop.f32.mrf.mxu1  ;;  %1400 = vmax.xlane.f32.xlu0 %v1399_v14  ;;  %v2688_v18 = vpop.f32.mrf.mxu0 }
 0x576   : > { %v1321_v19 = vpop.f32.mrf.mxu1  ;;  %v1370_v21 = vpop.f32.mrf.mxu0 }
 0x577   : > { %v1380_v23 = vmul.f32 0.17677669, %v1321_v19  ;;  %v1381_v25 = vmul.f32 0.17677669, %v1370_v21 }
 0x578   : > { %1403 = vmax.xlane.f32.xlu0 %v1402_v26  ;;  %v2693_v28 = vpop.f32.mrf.mxu1  ;;  %v2699_v29 = vpop.f32.mrf.mxu0 }
 0x579   : > { %v1391_v31 = vadd.f32 %v1385_v54, %v1381_v25  ;;  %v1390_v32 = vadd.f32 %v1385_v54, %v1380_v23 }
 0x57a   : > { %v1324_v33 = vpop.f32.mrf.mxu1  ;;  %v1373_v34 = vpop.f32.mrf.mxu0 }
 0x57b   : > { %v1408_v35 = vsel %vm1392_vm8, %v1391_v31, -inf  ;;  %v1405_v36 = vsel %vm1392_vm8, %v1390_v32, -inf }
 0x57c   : > { %1409 = vmax.xlane.f32.xlu1 %v1408_v35  ;;  %v2700_v37 = vpop.f32.mrf.mxu0  ;;  %1406 = vmax.xlane.f32.xlu0 %v1405_v36  ;;  %v2694_v38 = vpop.f32.mrf.mxu1 }
 0x58d   : > { %1514 = vrot.lane.b32.xlu1 %v3292_v17, %s2990_s20 }
 0x591   : > { %1562 = vrot.lane.b32.xlu1 %v3295_v20, %s2990_s20 }
 0x595   : > { %1610 = vrot.lane.b32.xlu1 %v3298_v24, %s2990_s20 }
 0x5f1   : > { %v1395_v39 = vpop.xlane.xlu0 %1394 }
 0x5f2   : > { %v1411_v40 = vsub.f32 %v1386_v57, %v1395_v39 }
 0x5f4   : > { %v1417_v41 = vmul.f32 1.442695, %v1411_v40 }
 0x5f5   : > { %v1398_v42 = vpop.xlane.xlu1 %1397 }
 0x5f6   : > { %2880 = vpow2.f32 %v1417_v41  ;;  %v1412_v46 = vsub.f32 %v1387_v1, %v1398_v42 }
 0x5f8   : > { %v1419_v47 = vmul.f32 1.442695, %v1412_v46 }
 0x5fa   : > { %2882 = vpow2.f32 %v1419_v47 }
 0x5fd   : > { %v1401_v51 = vpop.xlane.xlu0 %1400 }
 0x5fe   : > { %v1413_v2 = vsub.f32 %v3345_v10, %v1401_v51 }
 0x600   : > { %v1421_v5 = vmul.f32 1.442695, %v1413_v2 }
 0x601   : > { %v1404_v52 = vpop.xlane.xlu0 %1403 }
 0x602   : > { %v1414_v53 = vsub.f32 %v1389_v13, %v1404_v52 }
 0x603   : > { %v2881_v54 = vpop.eup %2880 }
 0x604   : > { %v1423_v55 = vmul.f32 1.442695, %v1414_v53  ;;  %v1429_v17 = vsel %vm1392_vm8, %v2881_v54, 0.0 }
 0x605   : > { %v1410_v56 = vpop.xlane.xlu1 %1409  ;;  %1430 = vadd.xlane.f32.xlu0 %v1429_v17  ;;  %v1407_v3 = vpop.xlane.xlu0 %1406 }
 0x606   : > { %2884 = vpow2.f32 %v1423_v55  ;;  %v1416_v20 = vsub.f32 %v1391_v31, %v1410_v56  ;;  %v1415_v6 = vsub.f32 %v1390_v32, %v1407_v3  ;;  %v2857_v55 = vld [vmem:[%s3136_s29] sm:$0xff]  }
 0x607   : > { %v2883_v24 = vpop.eup %2882 }
 0x608   : > { %v1427_v57 = vmul.f32 1.442695, %v1416_v20  ;;  %v1432_v58 = vsel %vm1392_vm8, %v2883_v24, 0.0  ;;  %v1425_v7 = vmul.f32 1.442695, %v1415_v6 }
 0x609   : > { %1433 = vadd.xlane.f32.xlu1 %v1432_v58  ;;  %v1515_v61 = vpop.permute.xlu1 %1514 }
 0x60a   : > { %2886 = vpow2.f32 %v1427_v57  ;;  %v1520_v59 = vsel %vm1470_vm9, %v1515_v61, 0 }
 0x60b   : > { %2708 = vmatpush3.bf16.msra.mxu0 %v1520_v59  ;;  %2888 = vpow2.f32 %v1421_v5 }
 0x60c   : > { %2719 = vmatprep.subr.bf16.mxu0 %v2986_v22  ;;  %2890 = vpow2.f32 %v1425_v7 }
 0x613   : > { %v2885_v62 = vpop.eup %2884 }
 0x614   : > { %v1438_v63 = vsel %vm1392_vm8, %v2885_v62, 0.0 }
 0x615   : > { %1439 = vadd.xlane.f32.xlu1 %v1438_v63 }
 0x617   : > { %v2887_v0 = vpop.eup %2886 }
 0x618   : > { %v1444_v1 = vsel %vm1392_vm8, %v2887_v0, 0.0  ;;  %v2889_v8 = vpop.eup %2888 }
 0x619   : > { %1445 = vadd.xlane.f32.xlu1 %v1444_v1  ;;  %v1435_v9 = vsel %vm1392_vm8, %v2889_v8, 0.0  ;;  %v2891_v60 = vpop.eup %2890 }
 0x61a   : > { %v1441_v4 = vsel %vm1392_vm8, %v2891_v60, 0.0 }
 0x61b   : > { %1465 = vrot.lane.b32.xlu0 %v3289_v15, %s2990_s20  ;;  %v1563_v15 = vpop.permute.xlu1 %1562 }
 0x61f   : > { %v1611_v10 = vpop.permute.xlu1 %1610 }
 0x620   : > { %v1616_v28 = vsel %vm1470_vm9, %v1611_v10, 0 }
 0x62a   : > { %1706 = vrot.lane.b32.xlu1 %v3304_v30, %s2990_s20 }
 0x63a   : > { %1436 = vadd.xlane.f32.xlu0 %v1435_v9 }
 0x63e   : > { %1442 = vadd.xlane.f32.xlu0 %v1441_v4 }
 0x654   : > { %1658 = vrot.lane.b32.xlu0 %v3301_v27, %s2990_s20  ;;  %v1568_v27 = vsel %vm1470_vm9, %v1563_v15, 0 }
 0x68e   : > { %v1431_v11 = vpop.xlane.xlu0 %1430 }
 0x68f   : > { %2892 = vrcp.f32 %v1431_v11 }
 0x692   : > { %v1434_v12 = vpop.xlane.xlu1 %1433  ;;  %v1466_v14 = vpop.permute.xlu0 %1465 }
 0x693   : > { %2894 = vrcp.f32 %v1434_v12  ;;  %v1472_v30 = vsel %vm1470_vm9, %v1466_v14, 0 }
 0x694   : > { %2702 = vmatpush3.bf16.msra.mxu1 %v1472_v30 }
 0x695   : > { %2713 = vmatprep.subr.bf16.mxu1 %v2986_v22 }
 0x69c   : > { %v2893_v13 = vpop.eup %2892 }
 0x69d   : > { %v1453_v16 = vmul.f32 %v2893_v13, %v2881_v54  ;;  %v2856_v54 = vld [vmem:[%s3136_s29 + $0x8] sm:$0xff]   ;;  %s3604_s29 = sld [smem:[#allocation15_spill]] (!%p2571_p6) }
 0x69e   : > { %v1440_v18 = vpop.xlane.xlu1 %1439 }
 0x69f   : > { %2896 = vrcp.f32 %v1440_v18  ;;  %v1459_v19 = vpack.c.bf16 %v1453_v16, %v1453_v16 }
 0x6a0   : > { %v2895_v21 = vpop.eup %2894 }
 0x6a1   : > { %2704 = vmatmul.mubr.msk.bf16.vlgmr.msra.gmra.mxu1 %vm1392_vm8, %v1459_v19  ;;  %v1454_v23 = vmul.f32 %v2895_v21, %v2883_v24 }
 0x6a2   : > { %2714 = vmatpush3.bf16.msra.mxu1 %v1568_v27  ;;  %v1446_v25 = vpop.xlane.xlu1 %1445  ;;  %2715 = vmatprep.mubr.msk.bf16.mxu1 %vm2987_vm6, %v2986_v22 }
 0x6a3   : > { %2898 = vrcp.f32 %v1446_v25  ;;  %v1460_v26 = vpack.c.bf16 %v1454_v23, %v1454_v23  ;;  %2725 = vmatprep.subr.bf16.mxu1 %v2986_v22 }
 0x6a5   : > { %2710 = vmatmul.mubr.msk.bf16.vlgmr.msra.gmra.mxu0 %vm1392_vm8, %v1460_v26 }
 0x6a6   : > { %2720 = vmatpush3.bf16.msra.mxu0 %v1616_v28  ;;  %2721 = vmatprep.mubr.msk.bf16.mxu0 %vm2987_vm6, %v2986_v22  ;;  %v1707_v32 = vpop.permute.xlu1 %1706 }
 0x6a7   : > { %2731 = vmatprep.subr.bf16.mxu0 %v2986_v22  ;;  %v1712_v35 = vsel %vm1470_vm9, %v1707_v32, 0 }
 0x6ac   : > { %v2897_v29 = vpop.eup %2896 }
 0x6ad   : > { %v1456_v31 = vmul.f32 %v2897_v29, %v2885_v62 }
 0x6af   : > { %v1462_v33 = vpack.c.bf16 %v1456_v31, %v1456_v31 }
 0x6b0   : > { %v2899_v34 = vpop.eup %2898 }
 0x6b1   : > { %2722 = vmatmul.mubr.msk.bf16.vlgmr.msra.gmra.mxu0 %vm1392_vm8, %v1462_v33  ;;  %v1458_v36 = vmul.f32 %v2899_v34, %v2887_v0 }
 0x6b2   : > { %2732 = vmatpush3.bf16.msra.mxu0 %v1712_v35  ;;  %2733 = vmatprep.mubr.msk.bf16.mxu0 %vm2987_vm6, %v2986_v22 }
 0x6b3   : > { %2753 = vmatprep.subr.bf16.mxu0 %v2986_v22  ;;  %v1464_v37 = vpack.c.bf16 %v1458_v36, %v1458_v36 }
 0x6b9   : > { %2734 = vmatmul.mubr.msk.bf16.vlgmr.msra.gmra.mxu0 %vm1392_vm8, %v1464_v37 }
 0x6ba   : > { %2757 = vmatprep.mubr.msk.bf16.mxu0 %vm2987_vm6, %v2986_v22 }
 0x6c3   : > { %v1437_v38 = vpop.xlane.xlu0 %1436 }
 0x6c4   : > { %2900 = vrcp.f32 %v1437_v38 }
 0x6c7   : > { %v1443_v39 = vpop.xlane.xlu0 %1442 }
 0x6c8   : > { %2902 = vrcp.f32 %v1443_v39 }
 0x6cb   : > { %v1659_v42 = vpop.permute.xlu0 %1658 }
 0x6cc   : > { %v1664_v51 = vsel %vm1470_vm9, %v1659_v42, 0 }
 0x6d1   : > { %v2901_v40 = vpop.eup %2900 }
 0x6d2   : > { %v1455_v41 = vmul.f32 %v2901_v40, %v2889_v8 }
 0x6d4   : > { %v1461_v46 = vpack.c.bf16 %v1455_v41, %v1455_v41 }
 0x6d5   : > { %v2903_v47 = vpop.eup %2902 }
 0x6d6   : > { %2716 = vmatmul.mubr.msk.bf16.vlgmr.msra.gmra.mxu1 %vm1392_vm8, %v1461_v46  ;;  %v1457_v52 = vmul.f32 %v2903_v47, %v2891_v60 }
 0x6d7   : > { %2726 = vmatpush3.bf16.msra.mxu1 %v1664_v51  ;;  %2727 = vmatprep.mubr.msk.bf16.mxu1 %vm2987_vm6, %v2986_v22 }
 0x6d8   : > { %2737 = vmatprep.subr.bf16.mxu1 %v2986_v22  ;;  %v1463_v53 = vpack.c.bf16 %v1457_v52, %v1457_v52 }
 0x6de   : > { %2728 = vmatmul.mubr.msk.bf16.vlgmr.msra.gmra.mxu1 %vm1392_vm8, %v1463_v53 }
 0x6df   : > { %2741 = vmatprep.mubr.msk.bf16.mxu1 %vm2987_vm6, %v2986_v22  ;;  %2738 = vmatpush3.bf16.msra.mxu1 %v2856_v54  ;;  %v2858_v54 = vld [vmem:[%s3145_s16 + $0x8] sm:$0xff]  }
 0x6e0   : > { %2739 = vmatprep.subr.bf16.mxu1 %v2986_v22  ;;  %2754 = vmatpush3.bf16.msra.mxu0 %v2858_v54 }
 0x6e1   : > { %2755 = vmatprep.subr.bf16.mxu0 %v2986_v22 }
 0x6e3   : > { %2740 = vmatpush3.bf16.msra.mxu1 %v2857_v55  ;;  %v2859_v55 = vld [vmem:[%s3145_s16] sm:$0xff]  }
 0x6e4   : > { %2769 = vmatprep.subr.bf16.mxu1 %v2986_v22  ;;  %2756 = vmatpush3.bf16.msra.mxu0 %v2859_v55 }
 0x761   : > { %v1508_v17 = vpop.f32.mrf.mxu1 }
 0x763   : > { %v2705_v56 = vpop.f32.mrf.mxu1 }
 0x765   : > { %v1511_v20 = vpop.f32.mrf.mxu1  ;;  %v1556_v24 = vpop.f32.mrf.mxu0 }
 0x766   : > { %v1754_v57 = vpack.c.bf16 %v1556_v24, %v1508_v17 }
 0x767   : > { %v2706_v58 = vpop.f32.mrf.mxu1  ;;  %v2711_v61 = vpop.f32.mrf.mxu0 }
 0x768   : > { %2742 = vmatmul.mubr.msk.bf16.vlgmr.msra.gmra.mxu1 %vm887_vm5, %v1754_v57 }
 0x769   : > { %v1559_v59 = vpop.f32.mrf.mxu0  ;;  %2745 = vmatprep.mubr.msk.bf16.mxu1 %vm2987_vm6, %v2986_v22 }
 0x76b   : > { %v2712_v62 = vpop.f32.mrf.mxu0 }
 0x771   : > { %v1652_v63 = vpop.f32.mrf.mxu0 }
 0x773   : > { %v2723_v0 = vpop.f32.mrf.mxu0 }
 0x775   : > { %v1655_v1 = vpop.f32.mrf.mxu0 }
 0x777   : > { %v2724_v2 = vpop.f32.mrf.mxu0 }
 0x779   : > { %v1748_v3 = vpop.f32.mrf.mxu0 }
 0x77b   : > { %v2735_v5 = vpop.f32.mrf.mxu0 }
 0x77d   : > { %v1751_v6 = vpop.f32.mrf.mxu0 }
 0x77f   : > { %v2736_v7 = vpop.f32.mrf.mxu0 }
 0x796   : > { %v1604_v8 = vpop.f32.mrf.mxu1 }
 0x797   : > { %v1755_v9 = vpack.c.bf16 %v1652_v63, %v1604_v8 }
 0x798   : > { %v2717_v60 = vpop.f32.mrf.mxu1 }
 0x799   : > { %2746 = vmatmul.mubr.msk.bf16.gmra.mxu1 %vm887_vm5, %v1755_v9 }
 0x79a   : > { %v1607_v4 = vpop.f32.mrf.mxu1  ;;  %2749 = vmatprep.mubr.msk.bf16.mxu1 %vm2987_vm6, %v2986_v22 }
 0x79c   : > { %v2718_v15 = vpop.f32.mrf.mxu1 }
 0x79e   : > { %v1700_v10 = vpop.f32.mrf.mxu1 }
 0x79f   : > { %v1756_v11 = vpack.c.bf16 %v1748_v3, %v1700_v10 }
 0x7a0   : > { %v2729_v12 = vpop.f32.mrf.mxu1 }
 0x7a1   : > { %2750 = vmatmul.mubr.msk.bf16.gmra.mxu1 %vm887_vm5, %v1756_v11 }
 0x7a2   : > { %v1703_v14 = vpop.f32.mrf.mxu1  ;;  %2785 = vmatprep.mubr.msk.bf16.mxu1 %vm2987_vm6, %v2986_v22 }
 0x7a4   : > { %v2730_v30 = vpop.f32.mrf.mxu1 }
 0x828   : > { %v1816_v13 = vpop.f32.mrf.mxu1 }
 0x829   : > { %v3415_v16 = vadd.f32 %v1816_v13, %v3194_v43 }
 0x82a   : > { %v2743_v18 = vpop.f32.mrf.mxu1 }
 0x82b   : > { %v1847_v19 = vsel %vm887_vm5, %v3415_v16, 0.0  ;;  %v2554_v18 = vld [vmem:[%s3602_s21] ss:$0 sm:$0xff] }
 0x82c   : > { %1848 = vadd.xlane.f32.xlu0 %v1847_v19  ;;  %v1819_v21 = vpop.f32.mrf.mxu1 }
 0x82d   : > { %v3420_v27 = vadd.f32 %v1819_v21, %v3198_v45 }
 0x82e   : > { %v2744_v23 = vpop.f32.mrf.mxu1 }
 0x82f   : > { %v1850_v25 = vsel %vm887_vm5, %v3420_v27, 0.0 }
 0x830   : > { %1851 = vadd.xlane.f32.xlu1 %v1850_v25  ;;  %v2555_v25 = vld [vmem:[%s728_s22] ss:$0 sm:$0xff] }
 0x859   : > { %v1824_v26 = vpop.f32.mrf.mxu1 }
 0x85a   : > { %v3425_v28 = vadd.f32 %v1824_v26, %v3196_v44 }
 0x85b   : > { %v2747_v43 = vpop.f32.mrf.mxu1 }
 0x85c   : > { %v1853_v29 = vsel %vm887_vm5, %v3425_v28, 0.0 }
 0x85d   : > { %1854 = vadd.xlane.f32.xlu0 %v1853_v29  ;;  %v1827_v31 = vpop.f32.mrf.mxu1 }
 0x85e   : > { %v3430_v32 = vadd.f32 %v1827_v31, %v3204_v48 }
 0x85f   : > { %v2748_v45 = vpop.f32.mrf.mxu1 }
 0x860   : > { %v1856_v33 = vsel %vm887_vm5, %v3430_v32, 0.0 }
 0x861   : > { %1857 = vadd.xlane.f32.xlu0 %v1856_v33  ;;  %v1832_v34 = vpop.f32.mrf.mxu1 }
 0x862   : > { %v3435_v35 = vadd.f32 %v1832_v34, %v3206_v49 }
 0x863   : > { %v2751_v44 = vpop.f32.mrf.mxu1 }
 0x864   : > { %v1859_v36 = vsel %vm887_vm5, %v3435_v35, 0.0 }
 0x865   : > { %1860 = vadd.xlane.f32.xlu0 %v1859_v36  ;;  %v1835_v37 = vpop.f32.mrf.mxu1 }
 0x866   : > { %v3440_v38 = vadd.f32 %v1835_v37, %v3208_v50 }
 0x867   : > { %v2752_v48 = vpop.f32.mrf.mxu1 }
 0x868   : > { %v1862_v39 = vsel %vm887_vm5, %v3440_v38, 0.0 }
 0x869   : > { %1863 = vadd.xlane.f32.xlu1 %v1862_v39 }
 0x8b5   : > { %v1849_v40 = vpop.xlane.xlu0 %1848 }
 0x8b6   : > { %v1865_v41 = vmul.f32 0.03125, %v1849_v40 }
 0x8b8   : > { %v1871_v49 = vsub.f32 %v3415_v16, %v1865_v41 }
 0x8b9   : > { %v1852_v42 = vpop.xlane.xlu1 %1851 }
 0x8ba   : > { %v1866_v46 = vmul.f32 0.03125, %v1852_v42  ;;  %v1877_v47 = vmul.f32 %v1871_v49, %v1871_v49 }
 0x8bc   : > { %v1872_v51 = vsub.f32 %v3420_v27, %v1866_v46  ;;  %v1883_v52 = vsel %vm887_vm5, %v1877_v47, 0.0 }
 0x8bd   : > { %1884 = vadd.xlane.f32.xlu0 %v1883_v52 }
 0x8be   : > { %v1878_v50 = vmul.f32 %v1872_v51, %v1872_v51 }
 0x8c0   : > { %v1886_v53 = vsel %vm887_vm5, %v1878_v50, 0.0 }
 0x8c1   : > { %1887 = vadd.xlane.f32.xlu1 %v1886_v53 }
 0x8e6   : > { %v1855_v17 = vpop.xlane.xlu0 %1854 }
 0x8e7   : > { %v1867_v56 = vmul.f32 0.03125, %v1855_v17 }
 0x8e9   : > { %v1873_v20 = vsub.f32 %v3425_v28, %v1867_v56 }
 0x8ea   : > { %v1858_v24 = vpop.xlane.xlu0 %1857 }
 0x8eb   : > { %v1868_v57 = vmul.f32 0.03125, %v1858_v24  ;;  %v1879_v58 = vmul.f32 %v1873_v20, %v1873_v20 }
 0x8ed   : > { %v1874_v61 = vsub.f32 %v3430_v32, %v1868_v57  ;;  %v1889_v59 = vsel %vm887_vm5, %v1879_v58, 0.0 }
 0x8ee   : > { %1890 = vadd.xlane.f32.xlu0 %v1889_v59  ;;  %v1861_v62 = vpop.xlane.xlu0 %1860 }
 0x8ef   : > { %v1869_v63 = vmul.f32 0.03125, %v1861_v62  ;;  %v1880_v0 = vmul.f32 %v1874_v61, %v1874_v61 }
 0x8f1   : > { %v1875_v1 = vsub.f32 %v3435_v35, %v1869_v63  ;;  %v1892_v2 = vsel %vm887_vm5, %v1880_v0, 0.0  ;;  %v2860_v0 = vld [vmem:[%s3155_s18 + $0x38] sm:$0xff]  }
 0x8f2   : > { %1893 = vadd.xlane.f32.xlu1 %v1892_v2  ;;  %v1864_v3 = vpop.xlane.xlu1 %1863  ;;  %2770 = vmatpush3.bf16.msra.mxu1 %v2860_v0  ;;  %v2862_v2 = vld [vmem:[%s3155_s18 + $0x28] sm:$0xff]  }
 0x8f3   : > { %v1870_v5 = vmul.f32 0.03125, %v1864_v3  ;;  %v1881_v6 = vmul.f32 %v1875_v1, %v1875_v1  ;;  %2771 = vmatprep.subr.bf16.mxu1 %v2986_v22  ;;  %v2863_v3 = vld [vmem:[%s3155_s18 + $0x20] sm:$0xff]  }
 0x8f5   : > { %v1876_v7 = vsub.f32 %v3440_v38, %v1870_v5  ;;  %v1895_v8 = vsel %vm887_vm5, %v1881_v6, 0.0  ;;  %v2864_v5 = vld [vmem:[%s3155_s18 + $0x18] sm:$0xff]   ;;  %v2865_v6 = vld [vmem:[%s3155_s18 + $0x10] sm:$0xff]  }
 0x8f6   : > { %1896 = vadd.xlane.f32.xlu0 %v1895_v8  ;;  %v2867_v8 = vld [vmem:[%s3155_s18] sm:$0xff]  }
 0x8f7   : > { %v1882_v9 = vmul.f32 %v1876_v7, %v1876_v7 }
 0x8f9   : > { %v1898_v60 = vsel %vm887_vm5, %v1882_v9, 0.0  ;;  %v2556_v9 = vld [vmem:[%s736_s28] ss:$0 sm:$0xff] }
 0x8fa   : > { %1899 = vadd.xlane.f32.xlu1 %v1898_v60 }
 0x946   : > { %v1885_v4 = vpop.xlane.xlu0 %1884 }
 0x947   : > { %v1901_v15 = vmul.f32 0.03125, %v1885_v4 }
 0x949   : > { %v1907_v10 = vadd.f32 1e-05, %v1901_v15 }
 0x94a   : > { %v1888_v11 = vpop.xlane.xlu1 %1887 }
 0x94b   : > { %2904 = vrsqrt.f32 %v1907_v10  ;;  %v1902_v12 = vmul.f32 0.03125, %v1888_v11 }
 0x94d   : > { %v1908_v14 = vadd.f32 1e-05, %v1902_v12 }
 0x94f   : > { %2906 = vrsqrt.f32 %v1908_v14 }
 0x958   : > { %v2905_v30 = vpop.eup %2904 }
 0x959   : > { %v1919_v13 = vmul.f32 %v2905_v30, %v1871_v49 }
 0x95b   : > { %v1931_v23 = vmul.f32 %v2554_v18, %v1919_v13 }
 0x95c   : > { %v2907_v19 = vpop.eup %2906 }
 0x95d   : > { %v1920_v21 = vmul.f32 %v2907_v19, %v1872_v51  ;;  %v1943_v43 = vadd.f32 %v2555_v25, %v1931_v23 }
 0x95f   : > { %v1932_v26 = vmul.f32 %v2554_v18, %v1920_v21 }
 0x961   : > { %v1944_v29 = vadd.f32 %v2555_v25, %v1932_v26 }
 0x963   : > { %v1949_v31 = vpack.c.bf16 %v1944_v29, %v1943_v43 }
 0x965   : > { %2758 = vmatmul.mubr.msk.bf16.vlgmr.msra.gmra.mxu0 %vm887_vm5, %v1949_v31 }
 0x966   : > { %2761 = vmatprep.mubr.msk.bf16.mxu0 %vm2987_vm6, %v2986_v22 }
 0x977   : > { %v1891_v45 = vpop.xlane.xlu0 %1890 }
 0x978   : > { %v1903_v33 = vmul.f32 0.03125, %v1891_v45 }
 0x97a   : > { %v1909_v34 = vadd.f32 1e-05, %v1903_v33 }
 0x97b   : > { %v1894_v44 = vpop.xlane.xlu1 %1893 }
 0x97c   : > { %2908 = vrsqrt.f32 %v1909_v34  ;;  %v1904_v36 = vmul.f32 0.03125, %v1894_v44 }
 0x97e   : > { %v1910_v37 = vadd.f32 1e-05, %v1904_v36 }
 0x97f   : > { %v1897_v48 = vpop.xlane.xlu0 %1896 }
 0x980   : > { %2910 = vrsqrt.f32 %v1910_v37  ;;  %v1905_v39 = vmul.f32 0.03125, %v1897_v48 }
 0x982   : > { %v1911_v40 = vadd.f32 1e-05, %v1905_v39 }
 0x983   : > { %v1900_v41 = vpop.xlane.xlu1 %1899 }
 0x984   : > { %2912 = vrsqrt.f32 %v1911_v40  ;;  %v1906_v49 = vmul.f32 0.03125, %v1900_v41 }
 0x986   : > { %v1912_v42 = vadd.f32 1e-05, %v1906_v49 }
 0x988   : > { %2914 = vrsqrt.f32 %v1912_v42 }
 0x989   : > { %v2909_v46 = vpop.eup %2908 }
 0x98a   : > { %v1921_v47 = vmul.f32 %v2909_v46, %v1873_v20 }
 0x98c   : > { %v1933_v50 = vmul.f32 %v2554_v18, %v1921_v47 }
 0x98d   : > { %v2911_v51 = vpop.eup %2910 }
 0x98e   : > { %v1922_v52 = vmul.f32 %v2911_v51, %v1874_v61  ;;  %v1945_v55 = vadd.f32 %v2555_v25, %v1933_v50 }
 0x990   : > { %v1934_v53 = vmul.f32 %v2554_v18, %v1922_v52 }
 0x991   : > { %v2913_v54 = vpop.eup %2912 }
 0x992   : > { %v1946_v17 = vadd.f32 %v2555_v25, %v1934_v53  ;;  %v1923_v56 = vmul.f32 %v2913_v54, %v1875_v1  ;;  %v2861_v1 = vld [vmem:[%s3155_s18 + $0x30] sm:$0xff]  }
 0x993   : > { %2772 = vmatpush3.bf16.msra.mxu1 %v2861_v1 }
 0x994   : > { %v1950_v24 = vpack.c.bf16 %v1946_v17, %v1945_v55  ;;  %v1935_v59 = vmul.f32 %v2554_v18, %v1923_v56  ;;  %2773 = vmatprep.subr.bf16.mxu1 %v2986_v22 }
 0x995   : > { %v2915_v57 = vpop.eup %2914 }
 0x996   : > { %2762 = vmatmul.mubr.msk.bf16.gmra.mxu0 %vm887_vm5, %v1950_v24  ;;  %v1924_v58 = vmul.f32 %v2915_v57, %v1876_v7  ;;  %v1947_v61 = vadd.f32 %v2555_v25, %v1935_v59  ;;  %v2866_v7 = vld [vmem:[%s3155_s18 + $0x8] sm:$0xff]  }
 0x997   : > { %2765 = vmatprep.mubr.msk.bf16.mxu0 %vm2987_vm6, %v2986_v22  ;;  %2774 = vmatpush3.bf16.msra.mxu1 %v2862_v2 }
 0x998   : > { %v1936_v20 = vmul.f32 %v2554_v18, %v1924_v58  ;;  %2775 = vmatprep.subr.bf16.mxu1 %v2986_v22 }
 0x99a   : > { %v1948_v62 = vadd.f32 %v2555_v25, %v1936_v20 }
 0x99b   : > { %2776 = vmatpush3.bf16.msra.mxu1 %v2863_v3 }
 0x99c   : > { %v1951_v63 = vpack.c.bf16 %v1948_v62, %v1947_v61  ;;  %2777 = vmatprep.subr.bf16.mxu1 %v2986_v22 }
 0x99e   : > { %2766 = vmatmul.mubr.msk.bf16.gmra.mxu0 %vm887_vm5, %v1951_v63 }
 0x99f   : > { %2778 = vmatpush3.bf16.msra.mxu1 %v2864_v5 }
 0x9a0   : > { %2779 = vmatprep.subr.bf16.mxu1 %v2986_v22 }
 0x9a3   : > { %2780 = vmatpush3.bf16.msra.mxu1 %v2865_v6 }
 0x9a4   : > { %2781 = vmatprep.subr.bf16.mxu1 %v2986_v22 }
 0x9a7   : > { %2782 = vmatpush3.bf16.msra.mxu1 %v2866_v7 }
 0x9a8   : > { %2783 = vmatprep.subr.bf16.mxu1 %v2986_v22 }
 0x9ab   : > { %2784 = vmatpush3.bf16.msra.mxu1 %v2867_v8 }
 0xa25   : > { %v2018_v60 = vpop.f32.mrf.mxu0 }
 0xa26   : > { %v2019_v4 = vadd.f32 %v2556_v9, %v2018_v60 }
 0xa27   : > { %v2759_v15 = vpop.f32.mrf.mxu0 }
 0xa28   : > { %v2041_v10 = vmul.f32 %v2019_v4, %v2019_v4 }
 0xa29   : > { %v2021_v11 = vpop.f32.mrf.mxu0 }
 0xa2a   : > { %v2047_v12 = vmul.f32 %v2041_v10, %v2019_v4  ;;  %v2022_v14 = vadd.f32 %v2556_v9, %v2021_v11 }
 0xa2b   : > { %v2760_v30 = vpop.f32.mrf.mxu0 }
 0xa2c   : > { %v2053_v13 = vmul.f32 0.044715, %v2047_v12  ;;  %v2042_v18 = vmul.f32 %v2022_v14, %v2022_v14 }
 0xa2e   : > { %v2059_v19 = vadd.f32 %v2053_v13, %v2019_v4  ;;  %v2048_v21 = vmul.f32 %v2042_v18, %v2022_v14 }
 0xa30   : > { %v2065_v23 = vmul.f32 0.7978846, %v2059_v19  ;;  %v2054_v25 = vmul.f32 0.044715, %v2048_v21 }
 0xa32   : > { %2916 = vtanh.f32 %v2065_v23  ;;  %v2060_v26 = vadd.f32 %v2054_v25, %v2022_v14 }
 0xa34   : > { %v2066_v43 = vmul.f32 0.7978846, %v2060_v26 }
 0xa36   : > { %2918 = vtanh.f32 %v2066_v43 }
 0xa3f   : > { %v2917_v29 = vpop.eup %2916 }
 0xa40   : > { %v2077_v31 = vadd.f32 1.0, %v2917_v29 }
 0xa42   : > { %v2083_v33 = vmul.f32 0.5, %v2077_v31 }
 0xa43   : > { %v2919_v45 = vpop.eup %2918 }
 0xa44   : > { %v2078_v34 = vadd.f32 1.0, %v2919_v45  ;;  %v2089_v36 = vmul.f32 %v2083_v33, %v2019_v4  ;;  %v2570_v33 = vld [vmem:[%s744_s17] ss:$0 sm:$0xff] }
 0xa46   : > { %v2084_v44 = vmul.f32 0.5, %v2078_v34 }
 0xa48   : > { %v2090_v37 = vmul.f32 %v2084_v44, %v2022_v14 }
 0xa4a   : > { %v2095_v48 = vpack.c.bf16 %v2090_v37, %v2089_v36 }
 0xa4c   : > { %2786 = vmatmul.mubr.bf16.vlgmr.msra.gmra.mxu1 %v2095_v48 }
 0xa4d   : > { %2789 = vmatprep.mubr.msk.bf16.mxu1 %vm2987_vm6, %v2986_v22 }
 0xa56   : > { %v2026_v39 = vpop.f32.mrf.mxu0 }
 0xa57   : > { %v2027_v40 = vadd.f32 %v2556_v9, %v2026_v39 }
 0xa58   : > { %v2763_v41 = vpop.f32.mrf.mxu0 }
 0xa59   : > { %v2043_v49 = vmul.f32 %v2027_v40, %v2027_v40 }
 0xa5a   : > { %v2029_v42 = vpop.f32.mrf.mxu0 }
 0xa5b   : > { %v2049_v46 = vmul.f32 %v2043_v49, %v2027_v40  ;;  %v2030_v47 = vadd.f32 %v2556_v9, %v2029_v42 }
 0xa5c   : > { %v2764_v51 = vpop.f32.mrf.mxu0 }
 0xa5d   : > { %v2055_v52 = vmul.f32 0.044715, %v2049_v46  ;;  %v2044_v50 = vmul.f32 %v2030_v47, %v2030_v47 }
 0xa5e   : > { %v2034_v53 = vpop.f32.mrf.mxu0 }
 0xa5f   : > { %v2061_v54 = vadd.f32 %v2055_v52, %v2027_v40  ;;  %v2050_v55 = vmul.f32 %v2044_v50, %v2030_v47  ;;  %v2035_v17 = vadd.f32 %v2556_v9, %v2034_v53 }
 0xa60   : > { %v2767_v56 = vpop.f32.mrf.mxu0 }
 0xa61   : > { %v2067_v24 = vmul.f32 0.7978846, %v2061_v54  ;;  %v2056_v57 = vmul.f32 0.044715, %v2050_v55  ;;  %v2045_v58 = vmul.f32 %v2035_v17, %v2035_v17 }
 0xa62   : > { %v2037_v59 = vpop.f32.mrf.mxu0 }
 0xa63   : > { %2920 = vtanh.f32 %v2067_v24  ;;  %v2062_v20 = vadd.f32 %v2056_v57, %v2030_v47  ;;  %v2051_v61 = vmul.f32 %v2045_v58, %v2035_v17  ;;  %v2038_v62 = vadd.f32 %v2556_v9, %v2037_v59 }
 0xa64   : > { %v2768_v63 = vpop.f32.mrf.mxu0 }
 0xa65   : > { %v2068_v0 = vmul.f32 0.7978846, %v2062_v20  ;;  %v2057_v1 = vmul.f32 0.044715, %v2051_v61  ;;  %v2046_v2 = vmul.f32 %v2038_v62, %v2038_v62 }
 0xa67   : > { %2922 = vtanh.f32 %v2068_v0  ;;  %v2063_v3 = vadd.f32 %v2057_v1, %v2035_v17  ;;  %v2052_v5 = vmul.f32 %v2046_v2, %v2038_v62 }
 0xa69   : > { %v2069_v6 = vmul.f32 0.7978846, %v2063_v3  ;;  %v2058_v7 = vmul.f32 0.044715, %v2052_v5 }
 0xa6b   : > { %2924 = vtanh.f32 %v2069_v6  ;;  %v2064_v8 = vadd.f32 %v2058_v7, %v2038_v62 }
 0xa6d   : > { %v2070_v60 = vmul.f32 0.7978846, %v2064_v8 }
 0xa6f   : > { %2926 = vtanh.f32 %v2070_v60 }
 0xa70   : > { %v2921_v4 = vpop.eup %2920 }
 0xa71   : > { %v2079_v15 = vadd.f32 1.0, %v2921_v4 }
 0xa73   : > { %v2085_v12 = vmul.f32 0.5, %v2079_v15 }
 0xa74   : > { %v2923_v10 = vpop.eup %2922 }
 0xa75   : > { %v2080_v11 = vadd.f32 1.0, %v2923_v10  ;;  %v2091_v30 = vmul.f32 %v2085_v12, %v2027_v40 }
 0xa77   : > { %v2086_v14 = vmul.f32 0.5, %v2080_v11 }
 0xa78   : > { %v2925_v9 = vpop.eup %2924 }
 0xa79   : > { %v2092_v13 = vmul.f32 %v2086_v14, %v2030_v47  ;;  %v2081_v18 = vadd.f32 1.0, %v2925_v9 }
 0xa7b   : > { %v2096_v19 = vpack.c.bf16 %v2092_v13, %v2091_v30  ;;  %v2087_v25 = vmul.f32 0.5, %v2081_v18 }
 0xa7c   : > { %v2927_v21 = vpop.eup %2926 }
 0xa7d   : > { %2790 = vmatmul.mubr.bf16.gmra.mxu1 %v2096_v19  ;;  %v2082_v23 = vadd.f32 1.0, %v2927_v21  ;;  %v2093_v43 = vmul.f32 %v2087_v25, %v2035_v17 }
 0xa7e   : > { %2793 = vmatprep.mubr.msk.bf16.mxu1 %vm2987_vm6, %v2986_v22 }
 0xa7f   : > { %v2088_v26 = vmul.f32 0.5, %v2082_v23 }
 0xa81   : > { %v2094_v29 = vmul.f32 %v2088_v26, %v2038_v62 }
 0xa83   : > { %v2097_v31 = vpack.c.bf16 %v2094_v29, %v2093_v43 }
 0xa85   : > { %2794 = vmatmul.mubr.bf16.gmra.mxu1 %v2097_v31 }
 0xb0c   : > { %v2196_v45 = vpop.f32.mrf.mxu1 }
 0xb0d   : > { %v2219_v34 = vadd.f32 %v2196_v45, %v3415_v16 }
 0xb0e   : > { %v2787_v44 = vpop.f32.mrf.mxu1 }
 0xb0f   : > { %v2232_v36 = vadd.f32 %v2570_v33, %v2219_v34 }
 0xb10   : > { %v2199_v37 = vpop.f32.mrf.mxu1 }
 0xb11   : > { %2238 = vst.msk [vmem:[#allocation2] sm:$0xff] %vm887_vm5, %v2232_v36  ;;  %v2220_v22 = vadd.f32 %v2199_v37, %v3420_v27 }
 0xb12   : > { %v2788_v48 = vpop.f32.mrf.mxu1 }
 0xb13   : > { %v2233_v39 = vadd.f32 %v2570_v33, %v2220_v22 }
 0xb15   : > { %2239 = vst.msk [vmem:[#allocation2 + $0x8] sm:$0xff] %vm887_vm5, %v2233_v39 }
 0xb3d   : > { %v2204_v40 = vpop.f32.mrf.mxu1 }
 0xb3e   : > { %v2221_v41 = vadd.f32 %v2204_v40, %v3425_v28 }
 0xb3f   : > { %v2791_v49 = vpop.f32.mrf.mxu1 }
 0xb40   : > { %v2234_v42 = vadd.f32 %v2570_v33, %v2221_v41 }
 0xb41   : > { %v2207_v46 = vpop.f32.mrf.mxu1 }
 0xb42   : > { %2240 = vst.msk [vmem:[#allocation2 + $0x10] sm:$0xff] %vm887_vm5, %v2234_v42  ;;  %v2222_v16 = vadd.f32 %v2207_v46, %v3430_v32 }
 0xb43   : > { %v2792_v47 = vpop.f32.mrf.mxu1 }
 0xb44   : > { %v2235_v51 = vadd.f32 %v2570_v33, %v2222_v16 }
 0xb45   : > { %v2212_v52 = vpop.f32.mrf.mxu1 }
 0xb46   : > { %2241 = vst.msk [vmem:[#allocation2 + $0x18] sm:$0xff] %vm887_vm5, %v2235_v51  ;;  %v2223_v27 = vadd.f32 %v2212_v52, %v3435_v35 }
 0xb47   : > { %v2795_v50 = vpop.f32.mrf.mxu1 }
 0xb48   : > { %v2236_v53 = vadd.f32 %v2570_v33, %v2223_v27 }
 0xb49   : > { %v2215_v54 = vpop.f32.mrf.mxu1 }
 0xb4a   : > { %2242 = vst.msk [vmem:[#allocation2 + $0x20] sm:$0xff] %vm887_vm5, %v2236_v53  ;;  %v2224_v28 = vadd.f32 %v2215_v54, %v3440_v38  ;;  %2247 = sbr.rel (%p2571_p6) target bundleno = 3215 (0xc8f), region = 100 }
 0xb4b   : > { %v2796_v55 = vpop.f32.mrf.mxu1 }
 0xb4c   : > { %v2237_v17 = vadd.f32 %v2570_v33, %v2224_v28 }
 0xb4e   : > { %2243 = vst.msk [vmem:[#allocation2 + $0x28] sm:$0xff] %vm887_vm5, %v2237_v17 }
 0xb4f   : > { %vm2251_vm10 = vcmask 1041409   ;;  %v2256_v32 = vrot.slane %v2235_v51, 7  ;;  %v2991_v56 = vmov 0.0   ;;  %v2928_v35 = vld [vmem:[%s3603_s1 + $0x18] sm:$0xff]   ;;  %v2929_v38 = vld [vmem:[%s3603_s1 + $0x10] sm:$0xff]   ;;  %vm2993_vm11 = vmmov 0  }
 0xb50   : > { %2797 = vmatprep.subr.bf16.mxu0 %v2991_v56  ;;  %2805 = vmatprep.mubr.msk.bf16.mxu0 %vm2993_vm11, %v2991_v56  ;;  %v2930_v57 = vld [vmem:[%s3603_s1 + $0x8] sm:$0xff]   ;;  %v2931_v58 = vld [vmem:[%s3603_s1] sm:$0xff]   ;;  %v2250_v59 = vrot.slane %v2233_v39, 7  ;;  %vm2302_vm12 = vcmask 523264  }
 0xb51   : > { %v2257_v24 = vsel %vm2251_vm10, %v2256_v32, %v2234_v42  ;;  %2798 = vmatpush3.bf16.msra.mxu0 %v2928_v35  ;;  %v2572_v0 = vld [vmem:[%s3604_s29] ss:$0 sm:$0xff] }
 0xb52   : > { %2258 = vrot.lane.b32.xlu0 %v2257_v24, %s2992_s25  ;;  %2799 = vmatprep.subr.bf16.mxu0 %v2991_v56  ;;  %v2252_v20 = vsel %vm2251_vm10, %v2250_v59, %v2232_v36 }
 0xb55   : > { %2800 = vmatpush3.bf16.msra.mxu0 %v2929_v38 }
 0xb56   : > { %2801 = vmatprep.subr.bf16.mxu0 %v2991_v56 }
 0xb59   : > { %2802 = vmatpush3.bf16.msra.mxu0 %v2930_v57 }
 0xb5a   : > { %2803 = vmatprep.subr.bf16.mxu0 %v2991_v56 }
 0xb5d   : > { %2804 = vmatpush3.bf16.msra.mxu0 %v2931_v58 }
 0xbc4   : > { %v2259_v61 = vpop.permute.xlu0 %2258 }
 0xbc5   : > { %v2261_v62 = vsel %vm887_vm5, %v2252_v20, %v2259_v61 }
 0xbc6   : > { %v2262_v63 = vpack.c.bf16 %v2261_v62, %v2261_v62 }
 0xbc8   : > { %2806 = vmatmul.mubr.msk.bf16.vlgmr.msra.gmra.mxu0 %vm2302_vm12, %v2262_v63 }
 0xc88   : > { %v2340_v1 = vpop.f32.mrf.mxu0 }
 0xc89   : > { %v2341_v2 = vadd.f32 %v2572_v0, %v2340_v1 }
 0xc8a   : > { %v2807_v3 = vpop.f32.mrf.mxu0 }
 0xc8b   : > { %2346 = vst [vmem:[#allocation3] sm:$0x3] %v2341_v2 }
 0xc8c   : > { %v2343_v5 = vpop.f32.mrf.mxu0 }
 0xc8e   : > { %v2808_v6 = vpop.f32.mrf.mxu0 }
 0xc8f PF: > { %s3605_s21 = sld [smem:[#allocation7_spill]]  ;;  %s2994_s22 = smov [#allocation3]  }
 0xc90   : > { %s2356_s2 = sshll.u32 %s2994_s22, 4  ;;  %s2357_s2 = int_to_ptr.vmem [resolvable:$true] %s2356_s2 }
 0xc91   : > { %s2932_s28 = scalar_lea.vmem %s2357_s2, 32  ;;  %p2939_p11 = scmp.lt.s32.totalorder %s2357_s2, %s2357_s2 }
 0xc92   : > { %p2933_p8 = scmp.ne.s32.totalorder %s2357_s2, %s2932_s28  ;;  %p2940_p12 = scmp.lt.s32.totalorder %s2932_s28, %s2932_s28 }
 0xc94   : > { %p2941_p13 = por %p2940_p12, %p2939_p11 }
 0xc95   : > { %s3606_s23 = sadd.s32 4294967295, %s3605_s21  }
 0xc96   : > { %p3538_p7 = scmp.eq.s32.totalorder %s3606_s23, 1 }
 0xc98   : > { %p2934_p9 = pnand %p2933_p8, %p3538_p7 }
 0xc9a   : > { %p2935_p10 = pneg %p2934_p9 }
 0xc9c   : > { %p2942_p0 = pnand %p2941_p13, %p2935_p10 }
 0xc9e   : > { %2945 = shalt.err (!%p2942_p0)
}
 0xc9f   : > { %s3608_s17 = sld [smem:[#allocation16_spill]] }
 0xca5   : > { %2810 = dma.vmem_to_hbm [thread:$0]  (%p3538_p7), %s2357_s2, 32, %s3608_s17, [#allocation4]  }
 0xca6   : > { %2969 = dma.done.wait (%p3538_p7), [#allocation4], 32  }
 0xca7   : > { %2971 = vsyncadd (%p3538_p7), [#allocation4], 4294967264 }
 0xca8 PF: > { %s3609_s25 = sld [smem:[#allocation7_spill]] }
 0xca9   : > { %s3610_s27 = sld [smem:[#allocation6_spill]] }
 0xcaa   : > { %s3611_s28 = sld [smem:[#allocation8_spill]] }
 0xcae   : > { %s29_s29 = sadd.s32 1, %s3609_s25  }
 0xcaf   : > { %p26_p1 = scmp.ge.s32.totalorder %s29_s29, 4  }
 0xcb1   :  { %28 = sbr.rel (!%p26_p1) target bundleno = 11 (0xb), region = 158 }
 0xcb6   :  { %2369 = vsyncpa [#allocation4], 1 }
 0xcb7   :  { %2371 = vsyncpa [#allocation4 + $0x1], 1 }

</bundles_post_ra>
